<compile_context>
chip_gen: v7x
topology: tpu7x:2x2x1
jax: 0.10.0
libtpu: 0.0.40
codegen_flags: <defaults>
</compile_context>

<pallas_src>
import functools

import numpy as np

import jax
import jax.numpy as jnp
from jax import lax
from jax.experimental import pallas as pl
from jax.experimental.pallas import tpu as pltpu


def _out_hw(H, W, k, stride, padding):
    return ((H + 2 * padding - k) // stride + 1,
            (W + 2 * padding - k) // stride + 1)


# ----------------------------------------------------------------------------
# Weight packing: fold depthwise + pointwise + W-direction zero padding into k
# banded (W*C, Wo*C_out) MXU weight matrices (host-side, done once).
# ----------------------------------------------------------------------------
def _build_banded_weight(w_dw, w_pw, k, stride, padding, W):
    """w_dw: PyTorch depthwise (C, 1, k, k); w_pw: PyTorch pointwise (C_out, C, 1, 1)."""
    C = w_dw.shape[0]
    C_out = w_pw.shape[0]
    Wo = (W + 2 * padding - k) // stride + 1
    dw = np.transpose(np.asarray(w_dw)[:, 0], (1, 2, 0))          # (kh, kw, c)
    pw = np.asarray(w_pw)[:, :, 0, 0].T                           # (c, co)
    B = np.zeros((k, W * C, Wo * C_out), np.float32)
    for kh in range(k):
        for wo in range(Wo):
            for kw in range(k):
                wi = wo * stride + kw - padding
                if 0 <= wi < W:                                   # W-padding folded in here
                    B[kh, wi * C:(wi + 1) * C, wo * C_out:(wo + 1) * C_out] = (
                        dw[kh, kw][:, None] * pw)
    return jnp.asarray(B)


def pack_params(torch_weights, k, stride, padding, H, W):
    """Repack PyTorch-layout SepConv weights for the Pallas kernels."""
    H1, W1 = _out_hw(H, W, k, stride, padding)
    del H1
    return {
        "B1": _build_banded_weight(torch_weights["dw1"], torch_weights["pw1"],
                                   k, stride, padding, W),
        "B2": _build_banded_weight(torch_weights["dw2"], torch_weights["pw2"],
                                   k, 1, padding, W1),
        "g1": jnp.asarray(torch_weights["g1"], jnp.float32),
        "b1": jnp.asarray(torch_weights["b1"], jnp.float32),
        "g2": jnp.asarray(torch_weights["g2"], jnp.float32),
        "b2": jnp.asarray(torch_weights["b2"], jnp.float32),
    }


# ----------------------------------------------------------------------------
# Fused stage kernel:
#   affine+ReLU -> H-pad into VMEM scratch -> k banded MXU matmuls
#   (= depthwise k*k + pointwise 1x1 + W-padding) -> y + per-image BN partials.
# Stateless per grid step => batch axis is "parallel" (megacore-safe).
# ----------------------------------------------------------------------------
def _fused_stage_kernel(x_ref, scale_ref, shift_ref, bw_ref,
                        y_ref, psum_ref, psq_ref, pad_ref,
                        *, k, stride, padding, H, Ho, h_off):
    # Fused pre-activation: x*scale + shift, then ReLU (lane-dense, all 128 lanes used).
    #   stage 1: scale=1, shift=0 -> plain ReLU; stage 2: folded BN1-apply + ReLU.
    x = x_ref[0].astype(jnp.float32)                              # (H, W*C)
    a = jnp.maximum(x * scale_ref[...] + shift_ref[...], 0.0)

    # H-direction zero padding: re-zero the scratch every step (no cross-step state),
    # store the interior at the sublane-aligned row offset h_off (multiple of 8).
    pad_ref[...] = jnp.zeros_like(pad_ref)
    pad_ref[pl.ds(h_off, H), :] = a

    # Depthwise + pointwise fused into k banded matmuls on the MXU (K = W*C, f32 acc).
    wo_co = y_ref.shape[-1]
    acc = jnp.zeros((Ho, wo_co), jnp.float32)
    for kh in range(k):                                           # unrolled (k is static)
        r0 = h_off - padding + kh
        if stride == 1:
            xs = pad_ref[pl.ds(r0, Ho), :]                        # (Ho, W*C)
        else:
            # TODO(synk): for stride=2 deinterleave rows once instead of a strided load.
            xs = pad_ref[pl.ds(r0, Ho, stride), :]
        acc = acc + jnp.dot(xs, bw_ref[kh], preferred_element_type=jnp.float32)

    # Store in the activation dtype; compute BN statistics from the *stored* values so
    # the statistics match the tensor BatchNorm actually normalizes downstream.
    y_out = acc.astype(y_ref.dtype)
    y_ref[0] = y_out                                              # lane-dense (Ho, Wo*C_out)

    # Per-image BN partials (still split by wo; folded over wo in the tiny finalize).
    # (Could also be a ones(1,Ho) @ y matmul on the MXU; this sublane reduce is ~4 vregs.)
    y_stat = y_out.astype(jnp.float32)
    psum_ref[0] = jnp.sum(y_stat, axis=0, keepdims=True)
    psq_ref[0] = jnp.sum(y_stat * y_stat, axis=0, keepdims=True)


def fused_sep_stage(x_flat, scale_row, shift_row, bweights, *,
                    k, stride, padding, H, W, C, C_out, out_dtype):
    """One fused SepConv stage on lane-dense activations.

    x_flat:       (N, H, W*C) activation (pre-affine / pre-ReLU), lane order (w, c).
    scale_row:    (1, W*C) per-channel affine, pre-tiled over W (shift_row likewise).
    bweights:     (k, W*C, Wo*C_out) banded depthwise+pointwise weights.
    Returns y (N, Ho, Wo*C_out) in out_dtype plus per-image f32 partial sum / sumsq.
    """
    N = x_flat.shape[0]
    Ho, Wo = _out_hw(H, W, k, stride, padding)
    WC = W * C
    WoCo = Wo * C_out
    h_off = max(8, ((padding + 7) // 8) * 8)                      # aligned store offset
    HP = ((h_off + H + padding + 7) // 8) * 8                     # padded-scratch rows

    kernel = functools.partial(_fused_stage_kernel, k=k, stride=stride, padding=padding,
                               H=H, Ho=Ho, h_off=h_off)
    return pl.pallas_call(
        kernel,
        out_shape=(
            jax.ShapeDtypeStruct((N, Ho, WoCo), out_dtype),
            jax.ShapeDtypeStruct((N, 1, WoCo), jnp.float32),
            jax.ShapeDtypeStruct((N, 1, WoCo), jnp.float32),
        ),
        grid=(N,),
        in_specs=[
            pl.BlockSpec((1, H, WC), lambda n: (n, 0, 0)),
            pl.BlockSpec((1, WC), lambda n: (0, 0)),
            pl.BlockSpec((1, WC), lambda n: (0, 0)),
            pl.BlockSpec((k, WC, WoCo), lambda n: (0, 0, 0)),     # constant index: 1 fetch
        ],
        out_specs=(
            pl.BlockSpec((1, Ho, WoCo), lambda n: (n, 0, 0)),
            pl.BlockSpec((1, 1, WoCo), lambda n: (n, 0, 0)),
            pl.BlockSpec((1, 1, WoCo), lambda n: (n, 0, 0)),
        ),
        scratch_shapes=[pltpu.VMEM((HP, WC), jnp.float32)],
        compiler_params=pltpu.CompilerParams(
            dimension_semantics=("parallel",),                    # no resident state
            vmem_limit_bytes=32 * 1024 * 1024,                    # explicit (v5e default 16MiB)
        ),
    )(x_flat, scale_row, shift_row, bweights)


# ----------------------------------------------------------------------------
# BatchNorm finalize ((C,)-sized math in plain JAX) and lane-dense apply kernel.
# ----------------------------------------------------------------------------
def _finalize_bn(psum, psq, gamma, beta, count, Wo, C, eps=1e-5):
    s = jnp.sum(psum, axis=(0, 1)).reshape(Wo, C).sum(axis=0)     # (C,)
    q = jnp.sum(psq, axis=(0, 1)).reshape(Wo, C).sum(axis=0)
    mean = s / count
    var = jnp.maximum(q / count - mean * mean, 0.0)               # biased var (training BN)
    # TODO(synk): E[x^2]-E[x]^2 in f32 is cancellation-prone when |mean| >> std; a
    # compensated / two-pass scheme would need one more activation read.
    scale_c = gamma * lax.rsqrt(var + eps)
    shift_c = beta - mean * scale_c
    return scale_c, shift_c
    # TODO(synk): running_mean / running_var buffer updates are not modeled
    # (they do not affect the training-mode forward output).


def _bn_apply_kernel(y_ref, scale_ref, shift_ref, o_ref):
    y = y_ref[...].astype(jnp.float32)                            # (1, H, W*C) lane-dense
    o_ref[...] = (y * scale_ref[...] + shift_ref[...]).astype(o_ref.dtype)


def bn_apply_lane_dense(y_flat, scale_row, shift_row, out_dtype=jnp.float32):
    N, H, WC = y_flat.shape
    return pl.pallas_call(
        _bn_apply_kernel,
        out_shape=jax.ShapeDtypeStruct((N, H, WC), out_dtype),
        grid=(N,),
        in_specs=[
            pl.BlockSpec((1, H, WC), lambda n: (n, 0, 0)),
            pl.BlockSpec((1, WC), lambda n: (0, 0)),
            pl.BlockSpec((1, WC), lambda n: (0, 0)),
        ],
        out_specs=pl.BlockSpec((1, H, WC), lambda n: (n, 0, 0)),
        compiler_params=pltpu.CompilerParams(
            dimension_semantics=("parallel",),
            vmem_limit_bytes=32 * 1024 * 1024,
        ),
    )(y_flat, scale_row, shift_row)


def _tile_row(v, reps):
    return jnp.tile(v.reshape(1, -1).astype(jnp.float32), (1, reps))


# ----------------------------------------------------------------------------
# Full SepConv forward.
# ----------------------------------------------------------------------------
def sep_conv_forward_nhwc(x_nhwc, packed, k, stride, padding, act_dtype=jnp.bfloat16):
    """NHWC-native forward: 3 HBM passes of the activation, no layout passes."""
    N, H, W, C_in = x_nhwc.shape
    C_out = packed["g2"].shape[0]
    x_flat = x_nhwc.reshape(N, H, W * C_in)                       # free: HBM metadata only

    # Stage 1: ReLU + depthwise(k, stride) + pointwise + BN1 partials, fused.
    ones_row = jnp.ones((1, W * C_in), jnp.float32)
    zeros_row = jnp.zeros((1, W * C_in), jnp.float32)
    y1, s1, q1 = fused_sep_stage(x_flat, ones_row, zeros_row, packed["B1"],
                                 k=k, stride=stride, padding=padding,
                                 H=H, W=W, C=C_in, C_out=C_in, out_dtype=act_dtype)
    H1, W1 = _out_hw(H, W, k, stride, padding)
    scale1, shift1 = _finalize_bn(s1, q1, packed["g1"], packed["b1"],
                                  float(N * H1 * W1), W1, C_in)

    # Stage 2: (BN1-apply + ReLU) + depthwise(k, 1) + pointwise + BN2 partials, fused.
    y2, s2, q2 = fused_sep_stage(y1, _tile_row(scale1, W1), _tile_row(shift1, W1),
                                 packed["B2"], k=k, stride=1, padding=padding,
                                 H=H1, W=W1, C=C_in, C_out=C_out, out_dtype=act_dtype)
    H2, W2 = _out_hw(H1, W1, k, 1, padding)
    scale2, shift2 = _finalize_bn(s2, q2, packed["g2"], packed["b2"],
                                  float(N * H2 * W2), W2, C_out)

    # Final BN2 apply: the only remaining standalone elementwise pass, lane-dense.
    out_flat = bn_apply_lane_dense(y2, _tile_row(scale2, W2), _tile_row(shift2, W2),
                                   out_dtype=jnp.float32)
    return out_flat.reshape(N, H2, W2, C_out)


def sep_conv_forward(x_nchw, packed, k, stride, padding, act_dtype=jnp.bfloat16):
    """PyTorch-layout (NCHW) compatibility shim around the NHWC-native pipeline."""
    x = jnp.transpose(x_nchw, (0, 2, 3, 1))                       # NCHW -> NHWC (shim only)
    out = sep_conv_forward_nhwc(x, packed, k, stride, padding, act_dtype)
    return jnp.transpose(out, (0, 3, 1, 2))                       # NHWC -> NCHW (shim only)


# ----------------------------------------------------------------------------
# Pure-JAX reference (PyTorch semantics) for verification.
# ----------------------------------------------------------------------------
def _torch_conv2d(x, w, stride, padding, groups):
    return lax.conv_general_dilated(
        x, w, window_strides=(stride, stride),
        padding=((padding, padding), (padding, padding)),
        dimension_numbers=("NCHW", "OIHW", "NCHW"),
        feature_group_count=groups)


def _bn_train(x, gamma, beta, eps=1e-5):
    mean = x.mean(axis=(0, 2, 3), keepdims=True)
    var = x.var(axis=(0, 2, 3), keepdims=True)                    # biased
    xn = (x - mean) / jnp.sqrt(var + eps)
    return xn * gamma.reshape(1, -1, 1, 1) + beta.reshape(1, -1, 1, 1)


def reference(x, tw, k, stride, padding, C_in):
    h = jnp.maximum(x, 0.0)
    h = _torch_conv2d(h, tw["dw1"], stride, padding, C_in)
    h = _torch_conv2d(h, tw["pw1"], 1, 0, 1)
    h = _bn_train(h, tw["g1"], tw["b1"])
    h = jnp.maximum(h, 0.0)
    h = _torch_conv2d(h, tw["dw2"], 1, padding, C_in)
    h = _torch_conv2d(h, tw["pw2"], 1, 0, 1)
    h = _bn_train(h, tw["g2"], tw["b2"])
    return h


if __name__ == "__main__":
    N, C_in, C_out, H, W = 2, 8, 16, 16, 16
    k, stride, padding = 3, 1, 1

    key = jax.random.PRNGKey(0)
    kx, k1, k2, k3, k4, k5, k6, k7, k8 = jax.random.split(key, 9)
    x = jax.random.normal(kx, (N, C_in, H, W), jnp.float32)

    # Deterministic synthetic weights in PyTorch layouts.
    torch_weights = {
        "dw1": 0.1 * jax.random.normal(k1, (C_in, 1, k, k), jnp.float32),   # groups=C_in
        "pw1": 0.1 * jax.random.normal(k2, (C_in, C_in, 1, 1), jnp.float32),
        "dw2": 0.1 * jax.random.normal(k3, (C_in, 1, k, k), jnp.float32),
        "pw2": 0.1 * jax.random.normal(k4, (C_out, C_in, 1, 1), jnp.float32),
        "g1": 1.0 + 0.1 * jax.random.normal(k5, (C_in,), jnp.float32),
        "b1": 0.1 * jax.random.normal(k6, (C_in,), jnp.float32),
        "g2": 1.0 + 0.1 * jax.random.normal(k7, (C_out,), jnp.float32),
        "b2": 0.1 * jax.random.normal(k8, (C_out,), jnp.float32),
    }
    packed = pack_params(torch_weights, k, stride, padding, H, W)

    ref = reference(x, torch_weights, k, stride, padding, C_in)

    # f32 inter-stage activations: tight check against the PyTorch-semantics reference.
    out = jax.block_until_ready(jax.jit(
        lambda xx: sep_conv_forward(xx, packed, k, stride, padding, jnp.float32))(x))
    assert out.shape == (N, C_out, H, W), out.shape
    assert jnp.allclose(out, ref, atol=1e-3, rtol=1e-3), float(jnp.abs(out - ref).max())

    # Default bf16 inter-stage activations (halved HBM traffic), f32 accumulation:
    # looser tolerance for the bf16 rounding of the stored activations.
    out_bf = jax.block_until_ready(jax.jit(
        lambda xx: sep_conv_forward(xx, packed, k, stride, padding, jnp.bfloat16))(x))
    assert out_bf.shape == (N, C_out, H, W), out_bf.shape
    assert jnp.allclose(out_bf, ref, atol=5e-2, rtol=5e-2), float(jnp.abs(out_bf - ref).max())

    print("KERNEL_OK")
</pallas_src>

<mosaic_0001>
module attributes {stable_mosaic.version = 11 : i64} {
  func.func @_fused_stage_kernel(%arg0: i32, %arg1: memref<1x16x128xf32, #tpu.memory_space<vmem>>, %arg2: memref<1x128xf32, #tpu.memory_space<vmem>>, %arg3: memref<1x128xf32, #tpu.memory_space<vmem>>, %arg4: memref<3x128x128xf32, #tpu.memory_space<vmem>>, %arg5: memref<1x16x128xf32, #tpu.memory_space<vmem>>, %arg6: memref<1x1x128xf32, #tpu.memory_space<vmem>>, %arg7: memref<1x1x128xf32, #tpu.memory_space<vmem>>, %arg8: memref<32x128xf32, #tpu.memory_space<vmem>>) attributes {dimension_semantics = [#tpu.dimension_semantics<parallel>], iteration_bounds = array<i64: 2>, scalar_prefetch = 0 : i64, scratch_operands = 1 : i64, tpu.core_type = #tpu.core_type<tc>, window_params = [{transform_indices = @transform_0, window_bounds = array<i64: 1, 16, 128>}, {pipeline_mode = #tpu.pipeline_mode<synchronous>, transform_indices = @transform_1, window_bounds = array<i64: 1, 128>}, {pipeline_mode = #tpu.pipeline_mode<synchronous>, transform_indices = @transform_2, window_bounds = array<i64: 1, 128>}, {pipeline_mode = #tpu.pipeline_mode<synchronous>, transform_indices = @transform_3, window_bounds = array<i64: 3, 128, 128>}, {transform_indices = @transform_4, window_bounds = array<i64: 1, 16, 128>}, {transform_indices = @transform_5, window_bounds = array<i64: 1, 1, 128>}, {transform_indices = @transform_6, window_bounds = array<i64: 1, 1, 128>}]} {
    %c0 = arith.constant 0 : index
    %c0_0 = arith.constant 0 : index
    %c0_1 = arith.constant 0 : index
    %0 = vector.load %arg1[%c0, %c0_0, %c0_1] : memref<1x16x128xf32, #tpu.memory_space<vmem>>, vector<1x16x128xf32>
    %1 = vector.shape_cast %0 : vector<1x16x128xf32> to vector<16x128xf32>
    %c0_2 = arith.constant 0 : index
    %c0_3 = arith.constant 0 : index
    %2 = vector.load %arg2[%c0_2, %c0_3] : memref<1x128xf32, #tpu.memory_space<vmem>>, vector<1x128xf32>
    %3 = vector.broadcast %2 : vector<1x128xf32> to vector<16x128xf32>
    %4 = arith.mulf %1, %3 : vector<16x128xf32>
    %c0_4 = arith.constant 0 : index
    %c0_5 = arith.constant 0 : index
    %5 = vector.load %arg3[%c0_4, %c0_5] : memref<1x128xf32, #tpu.memory_space<vmem>>, vector<1x128xf32>
    %6 = vector.broadcast %5 : vector<1x128xf32> to vector<16x128xf32>
    %7 = arith.addf %4, %6 : vector<16x128xf32>
    %cst = arith.constant 0.000000e+00 : f32
    %8 = vector.broadcast %cst : f32 to vector<16x128xf32>
    %9 = arith.maximumf %7, %8 : vector<16x128xf32>
    %cst_6 = arith.constant 0.000000e+00 : f32
    %10 = vector.broadcast %cst_6 : f32 to vector<32x128xf32>
    %c0_7 = arith.constant 0 : index
    %c0_8 = arith.constant 0 : index
    %11 = vector.load %arg8[%c0_7, %c0_8] : memref<32x128xf32, #tpu.memory_space<vmem>>, vector<32x128xf32>
    tpu.vector_store %arg8[%c0_7, %c0_8], %10 {strides = array<i32>} : memref<32x128xf32, #tpu.memory_space<vmem>>, vector<32x128xf32>,
    %c8 = arith.constant 8 : index
    %c0_9 = arith.constant 0 : index
    %12 = vector.load %arg8[%c8, %c0_9] : memref<32x128xf32, #tpu.memory_space<vmem>>, vector<16x128xf32>
    tpu.vector_store %arg8[%c8, %c0_9], %9 {strides = array<i32>} : memref<32x128xf32, #tpu.memory_space<vmem>>, vector<16x128xf32>,
    %cst_10 = arith.constant 0.000000e+00 : f32
    %13 = vector.broadcast %cst_10 : f32 to vector<16x128xf32>
    %c7 = arith.constant 7 : index
    %c0_11 = arith.constant 0 : index
    %14 = vector.load %arg8[%c7, %c0_11] : memref<32x128xf32, #tpu.memory_space<vmem>>, vector<16x128xf32>
    %c0_12 = arith.constant 0 : index
    %c0_13 = arith.constant 0 : index
    %c0_14 = arith.constant 0 : index
    %15 = vector.load %arg4[%c0_12, %c0_13, %c0_14] : memref<3x128x128xf32, #tpu.memory_space<vmem>>, vector<1x128x128xf32>
    %16 = vector.shape_cast %15 : vector<1x128x128xf32> to vector<128x128xf32>
    %cst_15 = arith.constant dense<0.000000e+00> : vector<16x128xf32>
    %17 = tpu.matmul %14, %16, %cst_15 {dimension_numbers = #tpu.dot_dimension_numbers<[1], [0], [0], [1], [0, 0, 1, 1], [], []>} : vector<16x128xf32>, vector<128x128xf32>, vector<16x128xf32> -> vector<16x128xf32>
    %18 = arith.addf %13, %17 : vector<16x128xf32>
    %c8_16 = arith.constant 8 : index
    %c0_17 = arith.constant 0 : index
    %19 = vector.load %arg8[%c8_16, %c0_17] : memref<32x128xf32, #tpu.memory_space<vmem>>, vector<16x128xf32>
    %c1 = arith.constant 1 : index
    %c0_18 = arith.constant 0 : index
    %c0_19 = arith.constant 0 : index
    %20 = vector.load %arg4[%c1, %c0_18, %c0_19] : memref<3x128x128xf32, #tpu.memory_space<vmem>>, vector<1x128x128xf32>
    %21 = vector.shape_cast %20 : vector<1x128x128xf32> to vector<128x128xf32>
    %cst_20 = arith.constant dense<0.000000e+00> : vector<16x128xf32>
    %22 = tpu.matmul %19, %21, %cst_20 {dimension_numbers = #tpu.dot_dimension_numbers<[1], [0], [0], [1], [0, 0, 1, 1], [], []>} : vector<16x128xf32>, vector<128x128xf32>, vector<16x128xf32> -> vector<16x128xf32>
    %23 = arith.addf %18, %22 : vector<16x128xf32>
    %c9 = arith.constant 9 : index
    %c0_21 = arith.constant 0 : index
    %24 = vector.load %arg8[%c9, %c0_21] : memref<32x128xf32, #tpu.memory_space<vmem>>, vector<16x128xf32>
    %c2 = arith.constant 2 : index
    %c0_22 = arith.constant 0 : index
    %c0_23 = arith.constant 0 : index
    %25 = vector.load %arg4[%c2, %c0_22, %c0_23] : memref<3x128x128xf32, #tpu.memory_space<vmem>>, vector<1x128x128xf32>
    %26 = vector.shape_cast %25 : vector<1x128x128xf32> to vector<128x128xf32>
    %cst_24 = arith.constant dense<0.000000e+00> : vector<16x128xf32>
    %27 = tpu.matmul %24, %26, %cst_24 {dimension_numbers = #tpu.dot_dimension_numbers<[1], [0], [0], [1], [0, 0, 1, 1], [], []>} : vector<16x128xf32>, vector<128x128xf32>, vector<16x128xf32> -> vector<16x128xf32>
    %28 = arith.addf %23, %27 : vector<16x128xf32>
    %c0_25 = arith.constant 0 : index
    %c0_26 = arith.constant 0 : index
    %c0_27 = arith.constant 0 : index
    %29 = vector.load %arg5[%c0_25, %c0_26, %c0_27] : memref<1x16x128xf32, #tpu.memory_space<vmem>>, vector<1x16x128xf32>
    %30 = vector.shape_cast %29 : vector<1x16x128xf32> to vector<16x128xf32>
    %31 = vector.shape_cast %28 : vector<16x128xf32> to vector<1x16x128xf32>
    tpu.vector_store %arg5[%c0_25, %c0_26, %c0_27], %31 {strides = array<i32>} : memref<1x16x128xf32, #tpu.memory_space<vmem>>, vector<1x16x128xf32>,
    %cst_28 = arith.constant dense<0.000000e+00> : vector<128xf32>
    %32 = vector.multi_reduction <add>, %28, %cst_28 [0] : vector<16x128xf32> to vector<128xf32>
    %33 = vector.shape_cast %32 : vector<128xf32> to vector<1x128xf32>
    %c0_29 = arith.constant 0 : index
    %c0_30 = arith.constant 0 : index
    %c0_31 = arith.constant 0 : index
    %34 = vector.load %arg6[%c0_29, %c0_30, %c0_31] : memref<1x1x128xf32, #tpu.memory_space<vmem>>, vector<1x1x128xf32>
    %35 = vector.shape_cast %34 : vector<1x1x128xf32> to vector<1x128xf32>
    %36 = vector.shape_cast %33 : vector<1x128xf32> to vector<1x1x128xf32>
    tpu.vector_store %arg6[%c0_29, %c0_30, %c0_31], %36 {strides = array<i32>} : memref<1x1x128xf32, #tpu.memory_space<vmem>>, vector<1x1x128xf32>,
    %37 = arith.mulf %28, %28 : vector<16x128xf32>
    %cst_32 = arith.constant dense<0.000000e+00> : vector<128xf32>
    %38 = vector.multi_reduction <add>, %37, %cst_32 [0] : vector<16x128xf32> to vector<128xf32>
    %39 = vector.shape_cast %38 : vector<128xf32> to vector<1x128xf32>
    %c0_33 = arith.constant 0 : index
    %c0_34 = arith.constant 0 : index
    %c0_35 = arith.constant 0 : index
    %40 = vector.load %arg7[%c0_33, %c0_34, %c0_35] : memref<1x1x128xf32, #tpu.memory_space<vmem>>, vector<1x1x128xf32>
    %41 = vector.shape_cast %40 : vector<1x1x128xf32> to vector<1x128xf32>
    %42 = vector.shape_cast %39 : vector<1x128xf32> to vector<1x1x128xf32>
    tpu.vector_store %arg7[%c0_33, %c0_34, %c0_35], %42 {strides = array<i32>} : memref<1x1x128xf32, #tpu.memory_space<vmem>>, vector<1x1x128xf32>,
    return
  }
  func.func @transform_0(%arg0: i32) -> (i32, i32, i32) {
    %c0_i32 = arith.constant 0 : i32
    %c0_i32_0 = arith.constant 0 : i32
    %c0_i32_1 = arith.constant 0 : i32
    return %arg0, %c0_i32, %c0_i32_0 : i32, i32, i32
  }
  func.func @transform_1(%arg0: i32) -> (i32, i32) {
    %c0_i32 = arith.constant 0 : i32
    %c0_i32_0 = arith.constant 0 : i32
    %c0_i32_1 = arith.constant 0 : i32
    return %c0_i32, %c0_i32_0 : i32, i32
  }
  func.func @transform_2(%arg0: i32) -> (i32, i32) {
    %c0_i32 = arith.constant 0 : i32
    %c0_i32_0 = arith.constant 0 : i32
    %c0_i32_1 = arith.constant 0 : i32
    return %c0_i32, %c0_i32_0 : i32, i32
  }
  func.func @transform_3(%arg0: i32) -> (i32, i32, i32) {
    %c0_i32 = arith.constant 0 : i32
    %c0_i32_0 = arith.constant 0 : i32
    %c0_i32_1 = arith.constant 0 : i32
    %c0_i32_2 = arith.constant 0 : i32
    return %c0_i32, %c0_i32_0, %c0_i32_1 : i32, i32, i32
  }
  func.func @transform_4(%arg0: i32) -> (i32, i32, i32) {
    %c0_i32 = arith.constant 0 : i32
    %c0_i32_0 = arith.constant 0 : i32
    %c0_i32_1 = arith.constant 0 : i32
    return %arg0, %c0_i32, %c0_i32_0 : i32, i32, i32
  }
  func.func @transform_5(%arg0: i32) -> (i32, i32, i32) {
    %c0_i32 = arith.constant 0 : i32
    %c0_i32_0 = arith.constant 0 : i32
    %c0_i32_1 = arith.constant 0 : i32
    return %arg0, %c0_i32, %c0_i32_0 : i32, i32, i32
  }
  func.func @transform_6(%arg0: i32) -> (i32, i32, i32) {
    %c0_i32 = arith.constant 0 : i32
    %c0_i32_0 = arith.constant 0 : i32
    %c0_i32_1 = arith.constant 0 : i32
    return %arg0, %c0_i32, %c0_i32_0 : i32, i32, i32
  }
}

module attributes {stable_mosaic.version = 11 : i64} {
  func.func @_fused_stage_kernel(%arg0: i32, %arg1: memref<1x16x128xf32, #tpu.memory_space<vmem>>, %arg2: memref<1x128xf32, #tpu.memory_space<vmem>>, %arg3: memref<1x128xf32, #tpu.memory_space<vmem>>, %arg4: memref<3x128x256xf32, #tpu.memory_space<vmem>>, %arg5: memref<1x16x256xf32, #tpu.memory_space<vmem>>, %arg6: memref<1x1x256xf32, #tpu.memory_space<vmem>>, %arg7: memref<1x1x256xf32, #tpu.memory_space<vmem>>, %arg8: memref<32x128xf32, #tpu.memory_space<vmem>>) attributes {dimension_semantics = [#tpu.dimension_semantics<parallel>], iteration_bounds = array<i64: 2>, scalar_prefetch = 0 : i64, scratch_operands = 1 : i64, tpu.core_type = #tpu.core_type<tc>, window_params = [{transform_indices = @transform_0, window_bounds = array<i64: 1, 16, 128>}, {pipeline_mode = #tpu.pipeline_mode<synchronous>, transform_indices = @transform_1, window_bounds = array<i64: 1, 128>}, {pipeline_mode = #tpu.pipeline_mode<synchronous>, transform_indices = @transform_2, window_bounds = array<i64: 1, 128>}, {pipeline_mode = #tpu.pipeline_mode<synchronous>, transform_indices = @transform_3, window_bounds = array<i64: 3, 128, 256>}, {transform_indices = @transform_4, window_bounds = array<i64: 1, 16, 256>}, {transform_indices = @transform_5, window_bounds = array<i64: 1, 1, 256>}, {transform_indices = @transform_6, window_bounds = array<i64: 1, 1, 256>}]} {
    %c0 = arith.constant 0 : index
    %c0_0 = arith.constant 0 : index
    %c0_1 = arith.constant 0 : index
    %0 = vector.load %arg1[%c0, %c0_0, %c0_1] : memref<1x16x128xf32, #tpu.memory_space<vmem>>, vector<1x16x128xf32>
    %1 = vector.shape_cast %0 : vector<1x16x128xf32> to vector<16x128xf32>
    %c0_2 = arith.constant 0 : index
    %c0_3 = arith.constant 0 : index
    %2 = vector.load %arg2[%c0_2, %c0_3] : memref<1x128xf32, #tpu.memory_space<vmem>>, vector<1x128xf32>
    %3 = vector.broadcast %2 : vector<1x128xf32> to vector<16x128xf32>
    %4 = arith.mulf %1, %3 : vector<16x128xf32>
    %c0_4 = arith.constant 0 : index
    %c0_5 = arith.constant 0 : index
    %5 = vector.load %arg3[%c0_4, %c0_5] : memref<1x128xf32, #tpu.memory_space<vmem>>, vector<1x128xf32>
    %6 = vector.broadcast %5 : vector<1x128xf32> to vector<16x128xf32>
    %7 = arith.addf %4, %6 : vector<16x128xf32>
    %cst = arith.constant 0.000000e+00 : f32
    %8 = vector.broadcast %cst : f32 to vector<16x128xf32>
    %9 = arith.maximumf %7, %8 : vector<16x128xf32>
    %cst_6 = arith.constant 0.000000e+00 : f32
    %10 = vector.broadcast %cst_6 : f32 to vector<32x128xf32>
    %c0_7 = arith.constant 0 : index
    %c0_8 = arith.constant 0 : index
    %11 = vector.load %arg8[%c0_7, %c0_8] : memref<32x128xf32, #tpu.memory_space<vmem>>, vector<32x128xf32>
    tpu.vector_store %arg8[%c0_7, %c0_8], %10 {strides = array<i32>} : memref<32x128xf32, #tpu.memory_space<vmem>>, vector<32x128xf32>,
    %c8 = arith.constant 8 : index
    %c0_9 = arith.constant 0 : index
    %12 = vector.load %arg8[%c8, %c0_9] : memref<32x128xf32, #tpu.memory_space<vmem>>, vector<16x128xf32>
    tpu.vector_store %arg8[%c8, %c0_9], %9 {strides = array<i32>} : memref<32x128xf32, #tpu.memory_space<vmem>>, vector<16x128xf32>,
    %cst_10 = arith.constant 0.000000e+00 : f32
    %13 = vector.broadcast %cst_10 : f32 to vector<16x256xf32>
    %c7 = arith.constant 7 : index
    %c0_11 = arith.constant 0 : index
    %14 = vector.load %arg8[%c7, %c0_11] : memref<32x128xf32, #tpu.memory_space<vmem>>, vector<16x128xf32>
    %c0_12 = arith.constant 0 : index
    %c0_13 = arith.constant 0 : index
    %c0_14 = arith.constant 0 : index
    %15 = vector.load %arg4[%c0_12, %c0_13, %c0_14] : memref<3x128x256xf32, #tpu.memory_space<vmem>>, vector<1x128x256xf32>
    %16 = vector.shape_cast %15 : vector<1x128x256xf32> to vector<128x256xf32>
    %cst_15 = arith.constant dense<0.000000e+00> : vector<16x256xf32>
    %17 = tpu.matmul %14, %16, %cst_15 {dimension_numbers = #tpu.dot_dimension_numbers<[1], [0], [0], [1], [0, 0, 1, 1], [], []>} : vector<16x128xf32>, vector<128x256xf32>, vector<16x256xf32> -> vector<16x256xf32>
    %18 = arith.addf %13, %17 : vector<16x256xf32>
    %c8_16 = arith.constant 8 : index
    %c0_17 = arith.constant 0 : index
    %19 = vector.load %arg8[%c8_16, %c0_17] : memref<32x128xf32, #tpu.memory_space<vmem>>, vector<16x128xf32>
    %c1 = arith.constant 1 : index
    %c0_18 = arith.constant 0 : index
    %c0_19 = arith.constant 0 : index
    %20 = vector.load %arg4[%c1, %c0_18, %c0_19] : memref<3x128x256xf32, #tpu.memory_space<vmem>>, vector<1x128x256xf32>
    %21 = vector.shape_cast %20 : vector<1x128x256xf32> to vector<128x256xf32>
    %cst_20 = arith.constant dense<0.000000e+00> : vector<16x256xf32>
    %22 = tpu.matmul %19, %21, %cst_20 {dimension_numbers = #tpu.dot_dimension_numbers<[1], [0], [0], [1], [0, 0, 1, 1], [], []>} : vector<16x128xf32>, vector<128x256xf32>, vector<16x256xf32> -> vector<16x256xf32>
    %23 = arith.addf %18, %22 : vector<16x256xf32>
    %c9 = arith.constant 9 : index
    %c0_21 = arith.constant 0 : index
    %24 = vector.load %arg8[%c9, %c0_21] : memref<32x128xf32, #tpu.memory_space<vmem>>, vector<16x128xf32>
    %c2 = arith.constant 2 : index
    %c0_22 = arith.constant 0 : index
    %c0_23 = arith.constant 0 : index
    %25 = vector.load %arg4[%c2, %c0_22, %c0_23] : memref<3x128x256xf32, #tpu.memory_space<vmem>>, vector<1x128x256xf32>
    %26 = vector.shape_cast %25 : vector<1x128x256xf32> to vector<128x256xf32>
    %cst_24 = arith.constant dense<0.000000e+00> : vector<16x256xf32>
    %27 = tpu.matmul %24, %26, %cst_24 {dimension_numbers = #tpu.dot_dimension_numbers<[1], [0], [0], [1], [0, 0, 1, 1], [], []>} : vector<16x128xf32>, vector<128x256xf32>, vector<16x256xf32> -> vector<16x256xf32>
    %28 = arith.addf %23, %27 : vector<16x256xf32>
    %c0_25 = arith.constant 0 : index
    %c0_26 = arith.constant 0 : index
    %c0_27 = arith.constant 0 : index
    %29 = vector.load %arg5[%c0_25, %c0_26, %c0_27] : memref<1x16x256xf32, #tpu.memory_space<vmem>>, vector<1x16x256xf32>
    %30 = vector.shape_cast %29 : vector<1x16x256xf32> to vector<16x256xf32>
    %31 = vector.shape_cast %28 : vector<16x256xf32> to vector<1x16x256xf32>
    tpu.vector_store %arg5[%c0_25, %c0_26, %c0_27], %31 {strides = array<i32>} : memref<1x16x256xf32, #tpu.memory_space<vmem>>, vector<1x16x256xf32>,
    %cst_28 = arith.constant dense<0.000000e+00> : vector<256xf32>
    %32 = vector.multi_reduction <add>, %28, %cst_28 [0] : vector<16x256xf32> to vector<256xf32>
    %33 = vector.shape_cast %32 : vector<256xf32> to vector<1x256xf32>
    %c0_29 = arith.constant 0 : index
    %c0_30 = arith.constant 0 : index
    %c0_31 = arith.constant 0 : index
    %34 = vector.load %arg6[%c0_29, %c0_30, %c0_31] : memref<1x1x256xf32, #tpu.memory_space<vmem>>, vector<1x1x256xf32>
    %35 = vector.shape_cast %34 : vector<1x1x256xf32> to vector<1x256xf32>
    %36 = vector.shape_cast %33 : vector<1x256xf32> to vector<1x1x256xf32>
    tpu.vector_store %arg6[%c0_29, %c0_30, %c0_31], %36 {strides = array<i32>} : memref<1x1x256xf32, #tpu.memory_space<vmem>>, vector<1x1x256xf32>,
    %37 = arith.mulf %28, %28 : vector<16x256xf32>
    %cst_32 = arith.constant dense<0.000000e+00> : vector<256xf32>
    %38 = vector.multi_reduction <add>, %37, %cst_32 [0] : vector<16x256xf32> to vector<256xf32>
    %39 = vector.shape_cast %38 : vector<256xf32> to vector<1x256xf32>
    %c0_33 = arith.constant 0 : index
    %c0_34 = arith.constant 0 : index
    %c0_35 = arith.constant 0 : index
    %40 = vector.load %arg7[%c0_33, %c0_34, %c0_35] : memref<1x1x256xf32, #tpu.memory_space<vmem>>, vector<1x1x256xf32>
    %41 = vector.shape_cast %40 : vector<1x1x256xf32> to vector<1x256xf32>
    %42 = vector.shape_cast %39 : vector<1x256xf32> to vector<1x1x256xf32>
    tpu.vector_store %arg7[%c0_33, %c0_34, %c0_35], %42 {strides = array<i32>} : memref<1x1x256xf32, #tpu.memory_space<vmem>>, vector<1x1x256xf32>,
    return
  }
  func.func @transform_0(%arg0: i32) -> (i32, i32, i32) {
    %c0_i32 = arith.constant 0 : i32
    %c0_i32_0 = arith.constant 0 : i32
    %c0_i32_1 = arith.constant 0 : i32
    return %arg0, %c0_i32, %c0_i32_0 : i32, i32, i32
  }
  func.func @transform_1(%arg0: i32) -> (i32, i32) {
    %c0_i32 = arith.constant 0 : i32
    %c0_i32_0 = arith.constant 0 : i32
    %c0_i32_1 = arith.constant 0 : i32
    return %c0_i32, %c0_i32_0 : i32, i32
  }
  func.func @transform_2(%arg0: i32) -> (i32, i32) {
    %c0_i32 = arith.constant 0 : i32
    %c0_i32_0 = arith.constant 0 : i32
    %c0_i32_1 = arith.constant 0 : i32
    return %c0_i32, %c0_i32_0 : i32, i32
  }
  func.func @transform_3(%arg0: i32) -> (i32, i32, i32) {
    %c0_i32 = arith.constant 0 : i32
    %c0_i32_0 = arith.constant 0 : i32
    %c0_i32_1 = arith.constant 0 : i32
    %c0_i32_2 = arith.constant 0 : i32
    return %c0_i32, %c0_i32_0, %c0_i32_1 : i32, i32, i32
  }
  func.func @transform_4(%arg0: i32) -> (i32, i32, i32) {
    %c0_i32 = arith.constant 0 : i32
    %c0_i32_0 = arith.constant 0 : i32
    %c0_i32_1 = arith.constant 0 : i32
    return %arg0, %c0_i32, %c0_i32_0 : i32, i32, i32
  }
  func.func @transform_5(%arg0: i32) -> (i32, i32, i32) {
    %c0_i32 = arith.constant 0 : i32
    %c0_i32_0 = arith.constant 0 : i32
    %c0_i32_1 = arith.constant 0 : i32
    return %arg0, %c0_i32, %c0_i32_0 : i32, i32, i32
  }
  func.func @transform_6(%arg0: i32) -> (i32, i32, i32) {
    %c0_i32 = arith.constant 0 : i32
    %c0_i32_0 = arith.constant 0 : i32
    %c0_i32_1 = arith.constant 0 : i32
    return %arg0, %c0_i32, %c0_i32_0 : i32, i32, i32
  }
}

module attributes {stable_mosaic.version = 11 : i64} {
  func.func @_bn_apply_kernel(%arg0: i32, %arg1: memref<1x16x256xf32, #tpu.memory_space<vmem>>, %arg2: memref<1x256xf32, #tpu.memory_space<vmem>>, %arg3: memref<1x256xf32, #tpu.memory_space<vmem>>, %arg4: memref<1x16x256xf32, #tpu.memory_space<vmem>>) attributes {dimension_semantics = [#tpu.dimension_semantics<parallel>], iteration_bounds = array<i64: 2>, scalar_prefetch = 0 : i64, scratch_operands = 0 : i64, tpu.core_type = #tpu.core_type<tc>, window_params = [{transform_indices = @transform_0, window_bounds = array<i64: 1, 16, 256>}, {pipeline_mode = #tpu.pipeline_mode<synchronous>, transform_indices = @transform_1, window_bounds = array<i64: 1, 256>}, {pipeline_mode = #tpu.pipeline_mode<synchronous>, transform_indices = @transform_2, window_bounds = array<i64: 1, 256>}, {transform_indices = @transform_3, window_bounds = array<i64: 1, 16, 256>}]} {
    %c0 = arith.constant 0 : index
    %c0_0 = arith.constant 0 : index
    %c0_1 = arith.constant 0 : index
    %0 = vector.load %arg1[%c0, %c0_0, %c0_1] : memref<1x16x256xf32, #tpu.memory_space<vmem>>, vector<1x16x256xf32>
    %c0_2 = arith.constant 0 : index
    %c0_3 = arith.constant 0 : index
    %1 = vector.load %arg2[%c0_2, %c0_3] : memref<1x256xf32, #tpu.memory_space<vmem>>, vector<1x256xf32>
    %2 = vector.shape_cast %1 : vector<1x256xf32> to vector<1x1x256xf32>
    %3 = vector.broadcast %2 : vector<1x1x256xf32> to vector<1x16x256xf32>
    %4 = arith.mulf %0, %3 : vector<1x16x256xf32>
    %c0_4 = arith.constant 0 : index
    %c0_5 = arith.constant 0 : index
    %5 = vector.load %arg3[%c0_4, %c0_5] : memref<1x256xf32, #tpu.memory_space<vmem>>, vector<1x256xf32>
    %6 = vector.shape_cast %5 : vector<1x256xf32> to vector<1x1x256xf32>
    %7 = vector.broadcast %6 : vector<1x1x256xf32> to vector<1x16x256xf32>
    %8 = arith.addf %4, %7 : vector<1x16x256xf32>
    %c0_6 = arith.constant 0 : index
    %c0_7 = arith.constant 0 : index
    %c0_8 = arith.constant 0 : index
    %9 = vector.load %arg4[%c0_6, %c0_7, %c0_8] : memref<1x16x256xf32, #tpu.memory_space<vmem>>, vector<1x16x256xf32>
    tpu.vector_store %arg4[%c0_6, %c0_7, %c0_8], %8 {strides = array<i32>} : memref<1x16x256xf32, #tpu.memory_space<vmem>>, vector<1x16x256xf32>,
    return
  }
  func.func @transform_0(%arg0: i32) -> (i32, i32, i32) {
    %c0_i32 = arith.constant 0 : i32
    %c0_i32_0 = arith.constant 0 : i32
    %c0_i32_1 = arith.constant 0 : i32
    return %arg0, %c0_i32, %c0_i32_0 : i32, i32, i32
  }
  func.func @transform_1(%arg0: i32) -> (i32, i32) {
    %c0_i32 = arith.constant 0 : i32
    %c0_i32_0 = arith.constant 0 : i32
    %c0_i32_1 = arith.constant 0 : i32
    return %c0_i32, %c0_i32_0 : i32, i32
  }
  func.func @transform_2(%arg0: i32) -> (i32, i32) {
    %c0_i32 = arith.constant 0 : i32
    %c0_i32_0 = arith.constant 0 : i32
    %c0_i32_1 = arith.constant 0 : i32
    return %c0_i32, %c0_i32_0 : i32, i32
  }
  func.func @transform_3(%arg0: i32) -> (i32, i32, i32) {
    %c0_i32 = arith.constant 0 : i32
    %c0_i32_0 = arith.constant 0 : i32
    %c0_i32_1 = arith.constant 0 : i32
    return %arg0, %c0_i32, %c0_i32_0 : i32, i32, i32
  }
}

</mosaic_0001>

<bundles_post_ra>
// kernel: _lambda_.3
= control target key start
LH: loop header
LB: loop body
LE: loop exit
PB: predicated region body
PF: predicated region fallthrough
CT: control target
= control target key end

     0   :  { %s1064_s21 = smov 0   ;;  %s1253_s0 = inlined_call_operand.vmem [shape: f32[2,16,128], index: 0, kind: input, shape index: {}]   ;;  %s1254_s1 = inlined_call_operand.vmem [shape: f32[1,128], index: 1, kind: input, shape index: {}]   ;;  %s1255_s2 = inlined_call_operand.vmem [shape: f32[1,128], index: 2, kind: input, shape index: {}]   ;;  %s1256_s3 = inlined_call_operand.vmem [shape: f32[3,128,128], index: 3, kind: input, shape index: {}]   ;;  %s1257_s4 = inlined_call_operand.vmem [shape: f32[2,16,128], index: 4, kind: output, shape index: {0}]   ;;  %s1258_s5 = inlined_call_operand.vmem [shape: f32[2,1,128], index: 5, kind: output, shape index: {1}]   ;;  %s1259_s6 = inlined_call_operand.vmem [shape: f32[2,1,128], index: 6, kind: output, shape index: {2}]  }
   0x1 LB: > { %s705_s22 = sadd.s32 4294967295, %s1026_s21   ;;  %p709_p0 = scmp.ge.s32.totalorder %s1026_s21, 1  ;;  %s1026_s21 = sphi %s1064_s21, %s17_s21  }
   0x2   : > { %p217_p1 = scmp.lt.s32.totalorder %s1026_s21, 3 }
   0x4   : > { %p218_p2 = pnand %p709_p0, %p217_p1 }
   0x5   : > { %v299_v0 = vld [vmem:[%s1256_s3] sm:$0xff] (!%p218_p2)  ;;  %v300_v1 = vld [vmem:[%s1256_s3 + $0x8] sm:$0xff] (!%p218_p2)  ;;  %v301_v2 = vld [vmem:[%s1256_s3 + $0x10] sm:$0xff] (!%p218_p2)  ;;  %p253_p3 = scmp.lt.s32.totalorder (!%p218_p2), %s705_s22, 1  ;;  %v1028_v5 = vmov (!%p218_p2), 0.0  }
   0x6   : > { %221 = sbr.rel (%p218_p2) target bundleno = 304 (0x130), region = 36  ;;  %v943_v3 = vpack.c.bf16 (!%p218_p2), %v300_v1, %v299_v0  ;;  %v302_v4 = vld [vmem:[%s1256_s3 + $0x18] sm:$0xff] (!%p218_p2)  ;;  %291 = vst [vmem:[#allocation2] sm:$0xff] (!%p218_p2), %v1028_v5  ;;  %294 = vst [vmem:[#allocation2 + $0x18] sm:$0xff] (!%p218_p2), %v1028_v5  ;;  %v303_v7 = vld [vmem:[%s1256_s3 + $0x20] sm:$0xff] (!%p218_p2) }
   0x7   : > { %v947_v6 = vpack.c.bf16 (!%p218_p2), %v302_v4, %v301_v2  ;;  %v304_v8 = vld [vmem:[%s1256_s3 + $0x28] sm:$0xff] (!%p218_p2)  ;;  %v305_v9 = vld [vmem:[%s1256_s3 + $0x30] sm:$0xff] (!%p218_p2)  ;;  %v306_v11 = vld [vmem:[%s1256_s3 + $0x38] sm:$0xff] (!%p218_p2) }
   0x8   : > { %944 = vmatprep.subr.bf16.mxu0 (!%p218_p2), %v943_v3  ;;  %v951_v10 = vpack.c.bf16 (!%p218_p2), %v304_v8, %v303_v7  ;;  %v716_v12 = vld [vmem:[%s1256_s3 + $0x80] sm:$0xff] (!%p218_p2)  ;;  %v717_v13 = vld [vmem:[%s1256_s3 + $0x88] sm:$0xff] (!%p218_p2)  ;;  %v718_v21 = vld [vmem:[%s1256_s3 + $0x90] sm:$0xff] (!%p218_p2)  ;;  %v955_v23 = vpack.c.bf16 (!%p218_p2), %v306_v11, %v305_v9 }
   0x9   : > { %946 = vmatpush3.bf16.msra.mxu0 (!%p218_p2), %v943_v3  ;;  %v911_v14 = vpack.c.bf16 (!%p218_p2), %v717_v13, %v716_v12  ;;  %v714_v16 = vld [vmem:[%s1254_s1] ss:$0 sm:$0xff] (!%p218_p2)  ;;  %v719_v22 = vld [vmem:[%s1256_s3 + $0x98] sm:$0xff] (!%p218_p2)  ;;  %v721_v27 = vld [vmem:[%s1256_s3 + $0xa8] sm:$0xff] (!%p218_p2) }
   0xa   : > { %948 = vmatprep.subr.bf16.mxu0 (!%p218_p2), %v947_v6  ;;  %v715_v17 = vld [vmem:[%s1255_s2] ss:$0 sm:$0xff] (!%p218_p2)  ;;  %v915_v25 = vpack.c.bf16 (!%p218_p2), %v719_v22, %v718_v21  ;;  %v308_v29 = vld [vmem:[%s1256_s3 + $0x48] sm:$0xff] (!%p218_p2)  ;;  %v722_v33 = vld [vmem:[%s1256_s3 + $0xb0] sm:$0xff] (!%p218_p2) }
   0xb   : > { %912 = vmatprep.subr.bf16.mxu1 (!%p218_p2), %v911_v14  ;;  %v720_v26 = vld [vmem:[%s1256_s3 + $0xa0] sm:$0xff] (!%p218_p2)  ;;  %v723_v34 = vld [vmem:[%s1256_s3 + $0xb8] sm:$0xff] (!%p218_p2)  ;;  %v309_v37 = vld [vmem:[%s1256_s3 + $0x50] sm:$0xff] (!%p218_p2) }
   0xc   : > { %914 = vmatpush3.bf16.msra.mxu1 (!%p218_p2), %v911_v14  ;;  %v307_v28 = vld [vmem:[%s1256_s3 + $0x40] sm:$0xff] (!%p218_p2)  ;;  %v919_v31 = vpack.c.bf16 (!%p218_p2), %v721_v27, %v720_v26  ;;  %v310_v38 = vld [vmem:[%s1256_s3 + $0x58] sm:$0xff] (!%p218_p2)  ;;  %v923_v39 = vpack.c.bf16 (!%p218_p2), %v723_v34, %v722_v33  ;;  %v725_v41 = vld [vmem:[%s1256_s3 + $0xc8] sm:$0xff] (!%p218_p2) }
   0xd   : > { %s1261_s22 = smov (!%p253_p3, %s705_s22), 1  ;;  %950 = vmatpush3.bf16.msra.mxu0 %v947_v6  ;;  %916 = vmatprep.subr.bf16.mxu1 %v915_v25  ;;  %v959_v36 = vpack.c.bf16 %v308_v29, %v307_v28  ;;  %v724_v40 = vld [vmem:[%s1256_s3 + $0xc0] sm:$0xff]  ;;  %v963_v42 = vpack.c.bf16 %v310_v38, %v309_v37  ;;  %v312_v44 = vld [vmem:[%s1256_s3 + $0x68] sm:$0xff]  ;;  %v726_v47 = vld [vmem:[%s1256_s3 + $0xd0] sm:$0xff] }
   0xe   : > { %s750_s13 = sshll.u32 %s1261_s22, 4  ;;  %952 = vmatprep.subr.bf16.mxu0 %v951_v10  ;;  %v311_v43 = vld [vmem:[%s1256_s3 + $0x60] sm:$0xff]  ;;  %v927_v45 = vpack.c.bf16 %v725_v41, %v724_v40  ;;  %v727_v48 = vld [vmem:[%s1256_s3 + $0xd8] sm:$0xff]  ;;  %v313_v50 = vld [vmem:[%s1256_s3 + $0x70] sm:$0xff]  ;;  %s265_s25 = scalar_lea.vmem %s1258_s5, %s1261_s22 }
   0xf   : > { %s257_s24 = scalar_lea.vmem %s1253_s0, %s750_s13  ;;  %v967_v49 = vpack.c.bf16 %v312_v44, %v311_v43  ;;  %v314_v51 = vld [vmem:[%s1256_s3 + $0x78] sm:$0xff]  ;;  %v931_v52 = vpack.c.bf16 %v727_v48, %v726_v47  ;;  %v728_v53 = vld [vmem:[%s1256_s3 + $0xe0] sm:$0xff]  ;;  %v729_v54 = vld [vmem:[%s1256_s3 + $0xe8] sm:$0xff]  ;;  %s262_s23 = scalar_lea.vmem %s1257_s4, %s750_s13 }
  0x10   : > { %v269_v15 = vld [vmem:[%s257_s24] sm:$0xff]  ;;  %v270_v19 = vld [vmem:[%s257_s24 + $0x8] sm:$0xff]  ;;  %918 = vmatpush3.bf16.msra.mxu1 %v915_v25  ;;  %v971_v55 = vpack.c.bf16 %v314_v51, %v313_v50  ;;  %v935_v58 = vpack.c.bf16 %v729_v54, %v728_v53  ;;  %v730_v59 = vld [vmem:[%s1256_s3 + $0xf0] sm:$0xff]  ;;  %s268_s28 = scalar_lea.vmem %s1259_s6, %s1261_s22 }
  0x11   : > { %v278_v18 = vmul.f32 %v714_v16, %v269_v15  ;;  %v279_v20 = vmul.f32 %v714_v16, %v270_v19  ;;  %954 = vmatpush3.bf16.msra.mxu0 %v951_v10  ;;  %920 = vmatprep.subr.bf16.mxu1 %v919_v31  ;;  %v732_v56 = vld [vmem:[%s1256_s3 + $0x100] sm:$0xff]  ;;  %v733_v57 = vld [vmem:[%s1256_s3 + $0x108] sm:$0xff]  ;;  %v731_v60 = vld [vmem:[%s1256_s3 + $0xf8] sm:$0xff] }
  0x12   : > { %956 = vmatprep.subr.bf16.mxu0 %v955_v23  ;;  %v975_v61 = vpack.c.bf16 %v733_v57, %v732_v56  ;;  %v734_v62 = vld [vmem:[%s1256_s3 + $0x110] sm:$0xff]  ;;  %v735_v63 = vld [vmem:[%s1256_s3 + $0x118] sm:$0xff]  ;;  %v939_v0 = vpack.c.bf16 %v731_v60, %v730_v59  ;;  %v736_v4 = vld [vmem:[%s1256_s3 + $0x120] sm:$0xff] }
  0x13   : > { %v287_v24 = vadd.f32 %v715_v17, %v278_v18  ;;  %v1134_v30 = vadd.f32 %v715_v17, %v279_v20  ;;  %v979_v2 = vpack.c.bf16 %v735_v63, %v734_v62  ;;  %v737_v5 = vld [vmem:[%s1256_s3 + $0x128] sm:$0xff]  ;;  %v738_v7 = vld [vmem:[%s1256_s3 + $0x130] sm:$0xff]  ;;  %v739_v8 = vld [vmem:[%s1256_s3 + $0x138] sm:$0xff] }
  0x14   : > { %922 = vmatpush3.bf16.msra.mxu1 %v919_v31  ;;  %v983_v6 = vpack.c.bf16 %v737_v5, %v736_v4  ;;  %v987_v9 = vpack.c.bf16 %v739_v8, %v738_v7  ;;  %v740_v10 = vld [vmem:[%s1256_s3 + $0x140] sm:$0xff]  ;;  %v741_v11 = vld [vmem:[%s1256_s3 + $0x148] sm:$0xff]  ;;  %v742_v13 = vld [vmem:[%s1256_s3 + $0x150] sm:$0xff] }
  0x15   : > { %v289_v32 = vmax.f32 %v287_v24, 0.0  ;;  %v290_v35 = vmax.f32 %v1134_v30, 0.0  ;;  %958 = vmatpush3.bf16.msra.mxu0 %v955_v23  ;;  %924 = vmatprep.subr.bf16.mxu1 %v923_v39  ;;  %v991_v12 = vpack.c.bf16 %v741_v11, %v740_v10  ;;  %v743_v14 = vld [vmem:[%s1256_s3 + $0x158] sm:$0xff]  ;;  %v744_v16 = vld [vmem:[%s1256_s3 + $0x160] sm:$0xff]  ;;  %v745_v17 = vld [vmem:[%s1256_s3 + $0x168] sm:$0xff] }
  0x16   : > { %960 = vmatprep.subr.bf16.mxu0 %v959_v36  ;;  %v995_v15 = vpack.c.bf16 %v743_v14, %v742_v13  ;;  %v999_v18 = vpack.c.bf16 %v745_v17, %v744_v16  ;;  %v746_v19 = vld [vmem:[%s1256_s3 + $0x170] sm:$0xff]  ;;  %v747_v20 = vld [vmem:[%s1256_s3 + $0x178] sm:$0xff] }
  0x17   : > { %295 = vst [vmem:[#allocation2 + $0x8] sm:$0xff] %v289_v32  ;;  %296 = vst [vmem:[#allocation2 + $0x10] sm:$0xff] %v290_v35  ;;  %838 = vmatprep.mubr.f32.mxu1 %v289_v32  ;;  %v1003_v21 = vpack.c.bf16 %v747_v20, %v746_v19 }
  0x18   : > { %926 = vmatpush3.bf16.msra.mxu1 %v923_v39 }
  0x19   : > { %962 = vmatpush3.bf16.msra.mxu0 %v959_v36  ;;  %928 = vmatprep.subr.bf16.mxu1 %v927_v45 }
  0x1a   : > { %964 = vmatprep.subr.bf16.mxu0 %v963_v42 }
  0x1c   : > { %930 = vmatpush3.bf16.msra.mxu1 %v927_v45 }
  0x1d   : > { %966 = vmatpush3.bf16.msra.mxu0 %v963_v42  ;;  %932 = vmatprep.subr.bf16.mxu1 %v931_v52 }
  0x1e   : > { %v297_v46 = vld [vmem:[#allocation2 + $0x7] sm:$0xff]  ;;  %968 = vmatprep.subr.bf16.mxu0 %v967_v49  ;;  %v298_v1 = vld [vmem:[#allocation2 + $0xf] sm:$0xff] }
  0x1f   : > { %873 = vmatprep.mubr.f32.mxu0 %v297_v46  ;;  %v484_v3 = vld [vmem:[#allocation2 + $0x9] sm:$0xff]  ;;  %v485_v22 = vld [vmem:[#allocation2 + $0x11] sm:$0xff] }
  0x20   : > { %934 = vmatpush3.bf16.msra.mxu1 %v931_v52 }
  0x21   : > { %970 = vmatpush3.bf16.msra.mxu0 %v967_v49  ;;  %936 = vmatprep.subr.bf16.mxu1 %v935_v58 }
  0x22   : > { %972 = vmatprep.subr.bf16.mxu0 %v971_v55 }
  0x24   : > { %938 = vmatpush3.bf16.msra.mxu1 %v935_v58 }
  0x25   : > { %974 = vmatpush3.bf16.msra.mxu0 %v971_v55  ;;  %940 = vmatprep.subr.bf16.mxu1 %v939_v0 }
  0x26   : > { %976 = vmatprep.subr.bf16.mxu0 %v975_v61 }
  0x28   : > { %874 = vmatmul.mubr.f32.vlgmr.msra.gmra.mrb[0].mxu0 %v298_v1  ;;  %942 = vmatpush3.bf16.msra.mxu1 %v939_v0 }
  0x29   : > { %978 = vmatpush3.bf16.msra.mxu0 %v975_v61  ;;  %908 = vmatprep.mubr.f32.mxu0 %v484_v3 }
  0x2a   : > { %980 = vmatprep.subr.bf16.mxu0 %v979_v2 }
  0x2b   : > { %839 = vmatmul.mubr.f32.vlgmr.msra.gmra.mrb[0].mxu1 %v290_v35 }
  0x2d   : > { %982 = vmatpush3.bf16.msra.mxu0 %v979_v2 }
  0x2e   : > { %984 = vmatprep.subr.bf16.mxu0 %v983_v6 }
  0x31   : > { %986 = vmatpush3.bf16.msra.mxu0 %v983_v6 }
  0x32   : > { %988 = vmatprep.subr.bf16.mxu0 %v987_v9 }
  0x35   : > { %990 = vmatpush3.bf16.msra.mxu0 %v987_v9 }
  0x36   : > { %992 = vmatprep.subr.bf16.mxu0 %v991_v12 }
  0x39   : > { %994 = vmatpush3.bf16.msra.mxu0 %v991_v12 }
  0x3a   : > { %996 = vmatprep.subr.bf16.mxu0 %v995_v15 }
  0x3d   : > { %998 = vmatpush3.bf16.msra.mxu0 %v995_v15 }
  0x3e   : > { %1000 = vmatprep.subr.bf16.mxu0 %v999_v18 }
  0x41   : > { %1002 = vmatpush3.bf16.msra.mxu0 %v999_v18 }
  0x42   : > { %1004 = vmatprep.subr.bf16.mxu0 %v1003_v21 }
  0x45   : > { %1006 = vmatpush3.bf16.msra.mxu0 %v1003_v21 }
  0x48   : > { %909 = vmatmul.mubr.f32.vlgmr.msra.gmra.mrb[0].mxu0 %v485_v22 }
  0xfe   : > { %v840_v23 = vpop.f32.mrb[0].mxu1 }
  0xff   : > { %v400_v24 = vpop.f32.mrb[1].mxu1 }
 0x11b   : > { %v910_v25 = vpop.f32.mrb[0].mxu0 }
 0x11c   : > { %v1007_v26 = vadd.f32 %v910_v25, %v840_v23  ;;  %v569_v27 = vpop.f32.mrb[1].mxu0 }
 0x11d   : > { %v1008_v28 = vadd.f32 %v569_v27, %v400_v24 }
 0x11e   : > { %581 = vst [vmem:[%s262_s23 + $0x8] sm:$0xff] %v1007_v26  ;;  %v591_v29 = vmul.f32 %v1007_v26, %v1007_v26 }
 0x11f   : > { %580 = vst [vmem:[%s262_s23] sm:$0xff] %v1008_v28  ;;  %v582_v30 = vadd.f32 %v1008_v28, %v1007_v26  ;;  %v590_v31 = vmul.f32 %v1008_v28, %v1008_v28 }
 0x121   : > { %v583_v32 = vrot.slane %v582_v30, 4  ;;  %v592_v33 = vadd.f32 %v591_v29, %v590_v31 }
 0x123   : > { %v584_v34 = vadd.f32 %v583_v32, %v582_v30  ;;  %v593_v35 = vrot.slane %v592_v33, 4 }
 0x125   : > { %v585_v36 = vrot.slane %v584_v34, 2  ;;  %v594_v37 = vadd.f32 %v593_v35, %v592_v33 }
 0x127   : > { %v586_v38 = vadd.f32 %v585_v36, %v584_v34  ;;  %v595_v39 = vrot.slane %v594_v37, 2 }
 0x129   : > { %v587_v40 = vrot.slane %v586_v38, 1  ;;  %v596_v41 = vadd.f32 %v595_v39, %v594_v37 }
 0x12b   : > { %v588_v42 = vadd.f32 %v587_v40, %v586_v38  ;;  %v597_v43 = vrot.slane %v596_v41, 1 }
 0x12d   : > { %589 = vst [vmem:[%s265_s25] sm:$0x1] %v588_v42  ;;  %v598_v44 = vadd.f32 %v597_v43, %v596_v41 }
 0x12f   : > { %599 = vst [vmem:[%s268_s28] sm:$0x1] %v598_v44 }
 0x130 PF: > { %s17_s21 = sadd.s32 1, %s1026_s21  }
 0x131   : > { %p14_p4 = scmp.ge.s32.totalorder %s17_s21, 4  }
 0x133   :  { %16 = sbr.rel (!%p14_p4) target bundleno = 1 (0x1), region = 92 }

// kernel: _lambda_.5
= control target key start
LH: loop header
LB: loop body
LE: loop exit
PB: predicated region body
PF: predicated region fallthrough
CT: control target
= control target key end

     0   :  { %s315_s12 = smov 0   ;;  %s338_s0 = inlined_call_operand.vmem [shape: f32[2,16,256], index: 0, kind: input, shape index: {}]   ;;  %s339_s1 = inlined_call_operand.vmem [shape: f32[1,256], index: 1, kind: input, shape index: {}]   ;;  %s340_s2 = inlined_call_operand.vmem [shape: f32[1,256], index: 2, kind: input, shape index: {}]   ;;  %s341_s3 = inlined_call_operand.vmem [shape: f32[2,16,256], index: 3, kind: output, shape index: {}]  }
   0x1 LB: > { %s266_s13 = sadd.s32 4294967295, %s293_s12   ;;  %p270_p0 = scmp.ge.s32.totalorder %s293_s12, 1  ;;  %s293_s12 = sphi %s315_s12, %s13_s12  }
   0x2   : > { %p137_p1 = scmp.lt.s32.totalorder %s293_s12, 3 }
   0x4   : > { %p138_p2 = pnand %p270_p0, %p137_p1 }
   0x5   : > { %p161_p3 = scmp.lt.s32.totalorder (!%p138_p2), %s266_s13, 1  ;;  %v177_v0 = vlaneseq (!%p138_p2)  ;;  %v175_v2 = vld [vmem:[%s339_s1] sm:$0x3] (!%p138_p2) }
   0x6   : > { %141 = sbr.rel (%p138_p2) target bundleno = 23 (0x17), region = 32  ;;  %v191_v3 = vld [vmem:[%s340_s2] sm:$0x3] (!%p138_p2) }
   0x7   : > { %v178_v1 = vshrl.u32 (!%p138_p2), %v177_v0, 7 }
   0x9   : > { %v179_v4 = vsub.s32 (!%p138_p2), 0, %v178_v1  ;;  %v183_v5 = vsub.s32 (!%p138_p2), 1, %v178_v1 }
   0xb   : > { %v180_v7 = vrot.slane (!%p138_p2), %v175_v2, %v179_v4  ;;  %v196_v8 = vrot.slane (!%p138_p2), %v191_v3, %v179_v4  ;;  %v184_v10 = vrot.slane (!%p138_p2), %v175_v2, %v183_v5  ;;  %v200_v11 = vrot.slane (!%p138_p2), %v191_v3, %v183_v5 }
   0xd   : > { %s343_s13 = smov (!%p161_p3, %s266_s13), 1 }
   0xe   : > { %s277_s18 = sshll.u32 %s343_s13, 5 }
   0xf   : > { %s165_s21 = scalar_lea.vmem %s338_s0, %s277_s18  ;;  %s170_s24 = scalar_lea.vmem %s341_s3, %s277_s18 }
  0x10   : > { %v171_v6 = vld [vmem:[%s165_s21] sm:$0xff]  ;;  %v172_v9 = vld [vmem:[%s165_s21 + $0x8] sm:$0xff]  ;;  %v173_v12 = vld [vmem:[%s165_s21 + $0x10] sm:$0xff] }
  0x11   : > { %v174_v13 = vld [vmem:[%s165_s21 + $0x18] sm:$0xff]  ;;  %v187_v14 = vmul.f32 %v180_v7, %v171_v6  ;;  %v188_v15 = vmul.f32 %v184_v10, %v172_v9  ;;  %v189_v16 = vmul.f32 %v180_v7, %v173_v12 }
  0x12   : > { %v190_v17 = vmul.f32 %v184_v10, %v174_v13 }
  0x13   : > { %v203_v18 = vadd.f32 %v196_v8, %v187_v14  ;;  %v204_v19 = vadd.f32 %v200_v11, %v188_v15  ;;  %v205_v20 = vadd.f32 %v196_v8, %v189_v16 }
  0x14   : > { %v206_v21 = vadd.f32 %v200_v11, %v190_v17 }
  0x15   : > { %207 = vst [vmem:[%s170_s24] sm:$0xff] %v203_v18  ;;  %208 = vst [vmem:[%s170_s24 + $0x8] sm:$0xff] %v204_v19 }
  0x16   : > { %209 = vst [vmem:[%s170_s24 + $0x10] sm:$0xff] %v205_v20  ;;  %210 = vst [vmem:[%s170_s24 + $0x18] sm:$0xff] %v206_v21 }
  0x17 PF: > { %s13_s12 = sadd.s32 1, %s293_s12  }
  0x18   : > { %p10_p4 = scmp.ge.s32.totalorder %s13_s12, 4  }
  0x1a   :  { %12 = sbr.rel (!%p10_p4) target bundleno = 1 (0x1), region = 62 }

// kernel: _lambda_.4
= control target key start
LH: loop header
LB: loop body
LE: loop exit
PB: predicated region body
PF: predicated region fallthrough
CT: control target
= control target key end

     0   :  { %s1091_s21 = smov 0   ;;  %s1435_s0 = inlined_call_operand.vmem [shape: f32[2,16,128], index: 0, kind: input, shape index: {}]   ;;  %s1436_s1 = inlined_call_operand.vmem [shape: f32[1,128], index: 1, kind: input, shape index: {}]   ;;  %s1437_s2 = inlined_call_operand.vmem [shape: f32[1,128], index: 2, kind: input, shape index: {}]   ;;  %s1438_s3 = inlined_call_operand.vmem [shape: f32[3,128,256], index: 3, kind: input, shape index: {}]   ;;  %s1439_s4 = inlined_call_operand.vmem [shape: f32[2,16,256], index: 4, kind: output, shape index: {0}]   ;;  %s1440_s5 = inlined_call_operand.vmem [shape: f32[2,1,256], index: 5, kind: output, shape index: {1}]   ;;  %s1441_s6 = inlined_call_operand.vmem [shape: f32[2,1,256], index: 6, kind: output, shape index: {2}]  }
   0x1 LB: > { %s835_s22 = sadd.s32 4294967295, %s1052_s21   ;;  %p839_p0 = scmp.ge.s32.totalorder %s1052_s21, 1  ;;  %s1052_s21 = sphi %s1091_s21, %s17_s21  }
   0x2   : > { %p217_p1 = scmp.lt.s32.totalorder %s1052_s21, 3 }
   0x4   : > { %p218_p2 = pnand %p839_p0, %p217_p1 }
   0x5   : > { %v849_v0 = vld [vmem:[%s1438_s3 + $0x108] sm:$0xff] (!%p218_p2)  ;;  %v851_v1 = vld [vmem:[%s1438_s3 + $0x118] sm:$0xff] (!%p218_p2)  ;;  %v848_v5 = vld [vmem:[%s1438_s3 + $0x100] sm:$0xff] (!%p218_p2)  ;;  %v1054_v7 = vmov (!%p218_p2), 0.0   ;;  %p1177_p3 = scmp.lt.s32.totalorder (!%p218_p2), %s835_s22, 1 }
   0x6   : > { %221 = sbr.rel (%p218_p2) target bundleno = 311 (0x137), region = 36  ;;  %v304_v2 = vld [vmem:[%s1438_s3 + $0x8] sm:$0xff] (!%p218_p2)  ;;  %v916_v3 = vpack.c.bf16 (!%p218_p2), %v851_v1, %v849_v0  ;;  %v306_v4 = vld [vmem:[%s1438_s3 + $0x18] sm:$0xff] (!%p218_p2)  ;;  %v850_v6 = vld [vmem:[%s1438_s3 + $0x110] sm:$0xff] (!%p218_p2)  ;;  %434 = vmatprep.mubr.f32.mxu1 (!%p218_p2), %v1054_v7  ;;  %295 = vst [vmem:[#allocation2] sm:$0xff] (!%p218_p2), %v1054_v7  ;;  %511 = vmatprep.mubr.f32.mxu0 (!%p218_p2), %v1054_v7 }
   0x7   : > { %298 = vst [vmem:[#allocation2 + $0x18] sm:$0xff] (!%p218_p2), %v1054_v7  ;;  %v948_v8 = vpack.c.bf16 (!%p218_p2), %v306_v4, %v304_v2  ;;  %v918_v9 = vpack.c.bf16 (!%p218_p2), %v850_v6, %v848_v5  ;;  %v303_v10 = vld [vmem:[%s1438_s3] sm:$0xff] (!%p218_p2)  ;;  %v305_v11 = vld [vmem:[%s1438_s3 + $0x10] sm:$0xff] (!%p218_p2)  ;;  %v853_v12 = vld [vmem:[%s1438_s3 + $0x128] sm:$0xff] (!%p218_p2) }
   0x8   : > { %917 = vmatprep.subr.bf16.mxu1 (!%p218_p2), %v916_v3  ;;  %v950_v13 = vpack.c.bf16 (!%p218_p2), %v305_v11, %v303_v10  ;;  %v855_v14 = vld [vmem:[%s1438_s3 + $0x138] sm:$0xff] (!%p218_p2)  ;;  %v308_v15 = vld [vmem:[%s1438_s3 + $0x28] sm:$0xff] (!%p218_p2)  ;;  %v852_v19 = vld [vmem:[%s1438_s3 + $0x120] sm:$0xff] (!%p218_p2) }
   0x9   : > { %v310_v16 = vld [vmem:[%s1438_s3 + $0x38] sm:$0xff] (!%p218_p2)  ;;  %949 = vmatprep.subr.bf16.mxu0 (!%p218_p2), %v948_v8  ;;  %919 = vmatpush1.bf16.msra.mxu1 (!%p218_p2), %v918_v9  ;;  %v920_v17 = vpack.c.bf16 (!%p218_p2), %v855_v14, %v853_v12  ;;  %v854_v20 = vld [vmem:[%s1438_s3 + $0x130] sm:$0xff] (!%p218_p2)  ;;  %v307_v21 = vld [vmem:[%s1438_s3 + $0x20] sm:$0xff] (!%p218_p2) }
   0xa   : > { %v952_v18 = vpack.c.bf16 (!%p218_p2), %v310_v16, %v308_v15  ;;  %951 = vmatpush1.bf16.msra.mxu0 (!%p218_p2), %v950_v13  ;;  %v922_v22 = vpack.c.bf16 (!%p218_p2), %v854_v20, %v852_v19  ;;  %v309_v23 = vld [vmem:[%s1438_s3 + $0x30] sm:$0xff] (!%p218_p2)  ;;  %v857_v24 = vld [vmem:[%s1438_s3 + $0x148] sm:$0xff] (!%p218_p2)  ;;  %v859_v25 = vld [vmem:[%s1438_s3 + $0x158] sm:$0xff] (!%p218_p2) }
   0xb   : > { %921 = vmatprep.subr.bf16.mxu1 (!%p218_p2), %v920_v17  ;;  %v954_v26 = vpack.c.bf16 (!%p218_p2), %v309_v23, %v307_v21  ;;  %v924_v27 = vpack.c.bf16 (!%p218_p2), %v859_v25, %v857_v24  ;;  %v312_v28 = vld [vmem:[%s1438_s3 + $0x48] sm:$0xff] (!%p218_p2)  ;;  %v314_v29 = vld [vmem:[%s1438_s3 + $0x58] sm:$0xff] (!%p218_p2)  ;;  %v856_v30 = vld [vmem:[%s1438_s3 + $0x140] sm:$0xff] (!%p218_p2) }
   0xc   : > { %953 = vmatprep.subr.bf16.mxu0 (!%p218_p2), %v952_v18  ;;  %v956_v31 = vpack.c.bf16 (!%p218_p2), %v314_v29, %v312_v28  ;;  %v858_v32 = vld [vmem:[%s1438_s3 + $0x150] sm:$0xff] (!%p218_p2)  ;;  %v311_v33 = vld [vmem:[%s1438_s3 + $0x40] sm:$0xff] (!%p218_p2)  ;;  %v861_v36 = vld [vmem:[%s1438_s3 + $0x168] sm:$0xff] (!%p218_p2) }
   0xd   : > { %v313_v34 = vld [vmem:[%s1438_s3 + $0x50] sm:$0xff]  ;;  %923 = vmatpush1.bf16.msra.mxu1 %v922_v22  ;;  %v926_v35 = vpack.c.bf16 %v858_v32, %v856_v30  ;;  %v863_v37 = vld [vmem:[%s1438_s3 + $0x178] sm:$0xff]  ;;  %v316_v38 = vld [vmem:[%s1438_s3 + $0x68] sm:$0xff]  ;;  %s1444_s22 = smov (!%p1177_p3, %s835_s22), 1 }
   0xe   : > { %955 = vmatpush1.bf16.msra.mxu0 %v954_v26  ;;  %925 = vmatprep.subr.bf16.mxu1 %v924_v27  ;;  %v958_v39 = vpack.c.bf16 %v313_v34, %v311_v33  ;;  %v928_v40 = vpack.c.bf16 %v863_v37, %v861_v36  ;;  %v318_v41 = vld [vmem:[%s1438_s3 + $0x78] sm:$0xff]  ;;  %v860_v42 = vld [vmem:[%s1438_s3 + $0x160] sm:$0xff]  ;;  %v862_v43 = vld [vmem:[%s1438_s3 + $0x170] sm:$0xff]  ;;  %s914_s24 = sshll.u32 %s1444_s22, 4  ;;  %s915_s28 = sshll.u32 %s1444_s22, 5 }
   0xf   : > { %957 = vmatprep.subr.bf16.mxu0 %v956_v31  ;;  %v960_v44 = vpack.c.bf16 %v318_v41, %v316_v38  ;;  %v315_v45 = vld [vmem:[%s1438_s3 + $0x60] sm:$0xff]  ;;  %v317_v46 = vld [vmem:[%s1438_s3 + $0x70] sm:$0xff]  ;;  %v865_v47 = vld [vmem:[%s1438_s3 + $0x188] sm:$0xff]  ;;  %v930_v51 = vpack.c.bf16 %v862_v43, %v860_v42  ;;  %s1269_s15 = scalar_lea.vmem %s1435_s0, %s914_s24  ;;  %s264_s7 = scalar_lea.vmem %s1439_s4, %s915_s28 }
  0x10   : > { %v867_v48 = vld [vmem:[%s1438_s3 + $0x198] sm:$0xff]  ;;  %v320_v49 = vld [vmem:[%s1438_s3 + $0x88] sm:$0xff]  ;;  %v962_v52 = vpack.c.bf16 %v317_v46, %v315_v45  ;;  %v864_v54 = vld [vmem:[%s1438_s3 + $0x180] sm:$0xff]  ;;  %s844_s8 = sshll.u32 %s1444_s22, 1 }
  0x11   : > { %v322_v50 = vld [vmem:[%s1438_s3 + $0x98] sm:$0xff]  ;;  %927 = vmatpush1.bf16.msra.mxu1 %v926_v35  ;;  %v932_v53 = vpack.c.bf16 %v867_v48, %v865_v47  ;;  %v866_v55 = vld [vmem:[%s1438_s3 + $0x190] sm:$0xff]  ;;  %v319_v56 = vld [vmem:[%s1438_s3 + $0x80] sm:$0xff]  ;;  %s268_s11 = scalar_lea.vmem %s1440_s5, %s844_s8  ;;  %s272_s13 = scalar_lea.vmem %s1441_s6, %s844_s8 }
  0x12   : > { %959 = vmatpush1.bf16.msra.mxu0 %v958_v39  ;;  %929 = vmatprep.subr.bf16.mxu1 %v928_v40  ;;  %v964_v57 = vpack.c.bf16 %v322_v50, %v320_v49  ;;  %v321_v58 = vld [vmem:[%s1438_s3 + $0x90] sm:$0xff]  ;;  %v869_v59 = vld [vmem:[%s1438_s3 + $0x1a8] sm:$0xff]  ;;  %v871_v60 = vld [vmem:[%s1438_s3 + $0x1b8] sm:$0xff]  ;;  %v934_v63 = vpack.c.bf16 %v866_v55, %v864_v54 }
  0x13   : > { %961 = vmatprep.subr.bf16.mxu0 %v960_v44  ;;  %v324_v61 = vld [vmem:[%s1438_s3 + $0xa8] sm:$0xff]  ;;  %v326_v62 = vld [vmem:[%s1438_s3 + $0xb8] sm:$0xff]  ;;  %v966_v0 = vpack.c.bf16 %v321_v58, %v319_v56  ;;  %v936_v1 = vpack.c.bf16 %v871_v60, %v869_v59  ;;  %v868_v2 = vld [vmem:[%s1438_s3 + $0x1a0] sm:$0xff] }
  0x14   : > { %v870_v3 = vld [vmem:[%s1438_s3 + $0x1b0] sm:$0xff]  ;;  %v323_v4 = vld [vmem:[%s1438_s3 + $0xa0] sm:$0xff]  ;;  %v968_v5 = vpack.c.bf16 %v326_v62, %v324_v61  ;;  %v873_v8 = vld [vmem:[%s1438_s3 + $0x1c8] sm:$0xff] }
  0x15   : > { %931 = vmatpush1.bf16.msra.mxu1 %v930_v51  ;;  %v325_v6 = vld [vmem:[%s1438_s3 + $0xb0] sm:$0xff]  ;;  %v875_v9 = vld [vmem:[%s1438_s3 + $0x1d8] sm:$0xff]  ;;  %v328_v10 = vld [vmem:[%s1438_s3 + $0xc8] sm:$0xff]  ;;  %v938_v12 = vpack.c.bf16 %v870_v3, %v868_v2 }
  0x16   : > { %963 = vmatpush1.bf16.msra.mxu0 %v962_v52  ;;  %933 = vmatprep.subr.bf16.mxu1 %v932_v53  ;;  %v330_v11 = vld [vmem:[%s1438_s3 + $0xd8] sm:$0xff]  ;;  %v872_v13 = vld [vmem:[%s1438_s3 + $0x1c0] sm:$0xff]  ;;  %v874_v14 = vld [vmem:[%s1438_s3 + $0x1d0] sm:$0xff]  ;;  %v970_v16 = vpack.c.bf16 %v325_v6, %v323_v4  ;;  %v940_v17 = vpack.c.bf16 %v875_v9, %v873_v8 }
  0x17   : > { %965 = vmatprep.subr.bf16.mxu0 %v964_v57  ;;  %v327_v15 = vld [vmem:[%s1438_s3 + $0xc0] sm:$0xff]  ;;  %v329_v18 = vld [vmem:[%s1438_s3 + $0xd0] sm:$0xff]  ;;  %v972_v21 = vpack.c.bf16 %v330_v11, %v328_v10  ;;  %v877_v22 = vld [vmem:[%s1438_s3 + $0x1e8] sm:$0xff]  ;;  %v942_v28 = vpack.c.bf16 %v874_v14, %v872_v13 }
  0x18   : > { %v273_v19 = vld [vmem:[%s1269_s15] sm:$0xff]  ;;  %v879_v23 = vld [vmem:[%s1438_s3 + $0x1f8] sm:$0xff]  ;;  %v332_v26 = vld [vmem:[%s1438_s3 + $0xe8] sm:$0xff]  ;;  %v974_v30 = vpack.c.bf16 %v329_v18, %v327_v15 }
  0x19   : > { %935 = vmatpush1.bf16.msra.mxu1 %v934_v63  ;;  %v846_v20 = vld [vmem:[%s1436_s1] ss:$0 sm:$0xff]  ;;  %v334_v27 = vld [vmem:[%s1438_s3 + $0xf8] sm:$0xff]  ;;  %v944_v31 = vpack.c.bf16 %v879_v23, %v877_v22  ;;  %v878_v33 = vld [vmem:[%s1438_s3 + $0x1f0] sm:$0xff] }
  0x1a   : > { %967 = vmatpush1.bf16.msra.mxu0 %v966_v0  ;;  %937 = vmatprep.subr.bf16.mxu1 %v936_v1  ;;  %v282_v24 = vmul.f32 %v846_v20, %v273_v19  ;;  %v847_v25 = vld [vmem:[%s1437_s2] ss:$0 sm:$0xff]  ;;  %v976_v35 = vpack.c.bf16 %v334_v27, %v332_v26  ;;  %v333_v36 = vld [vmem:[%s1438_s3 + $0xf0] sm:$0xff]  ;;  %v881_v38 = vld [vmem:[%s1438_s3 + $0x208] sm:$0xff] }
  0x1b   : > { %969 = vmatprep.subr.bf16.mxu0 %v968_v5  ;;  %v876_v32 = vld [vmem:[%s1438_s3 + $0x1e0] sm:$0xff]  ;;  %v883_v39 = vld [vmem:[%s1438_s3 + $0x218] sm:$0xff]  ;;  %v882_v44 = vld [vmem:[%s1438_s3 + $0x210] sm:$0xff] }
  0x1c   : > { %v291_v29 = vadd.f32 %v847_v25, %v282_v24  ;;  %v331_v34 = vld [vmem:[%s1438_s3 + $0xe0] sm:$0xff]  ;;  %v946_v40 = vpack.c.bf16 %v878_v33, %v876_v32  ;;  %v980_v42 = vpack.c.bf16 %v883_v39, %v881_v38  ;;  %v885_v45 = vld [vmem:[%s1438_s3 + $0x228] sm:$0xff]  ;;  %v887_v46 = vld [vmem:[%s1438_s3 + $0x238] sm:$0xff] }
  0x1d   : > { %939 = vmatpush1.bf16.msra.mxu1 %v938_v12  ;;  %v978_v41 = vpack.c.bf16 %v333_v36, %v331_v34  ;;  %v880_v43 = vld [vmem:[%s1438_s3 + $0x200] sm:$0xff]  ;;  %v274_v47 = vld [vmem:[%s1269_s15 + $0x8] sm:$0xff]  ;;  %v984_v50 = vpack.c.bf16 %v887_v46, %v885_v45  ;;  %v886_v52 = vld [vmem:[%s1438_s3 + $0x230] sm:$0xff] }
  0x1e   : > { %971 = vmatpush1.bf16.msra.mxu0 %v970_v16  ;;  %941 = vmatprep.subr.bf16.mxu1 %v940_v17  ;;  %v293_v37 = vmax.f32 %v291_v29, 0.0  ;;  %v982_v48 = vpack.c.bf16 %v882_v44, %v880_v43  ;;  %v283_v49 = vmul.f32 %v846_v20, %v274_v47  ;;  %v884_v51 = vld [vmem:[%s1438_s3 + $0x220] sm:$0xff]  ;;  %v889_v53 = vld [vmem:[%s1438_s3 + $0x248] sm:$0xff]  ;;  %v891_v54 = vld [vmem:[%s1438_s3 + $0x258] sm:$0xff] }
  0x1f   : > { %973 = vmatprep.subr.bf16.mxu0 %v972_v21  ;;  %v986_v57 = vpack.c.bf16 %v886_v52, %v884_v51  ;;  %v988_v59 = vpack.c.bf16 %v891_v54, %v889_v53  ;;  %v888_v60 = vld [vmem:[%s1438_s3 + $0x240] sm:$0xff]  ;;  %v890_v61 = vld [vmem:[%s1438_s3 + $0x250] sm:$0xff]  ;;  %v893_v62 = vld [vmem:[%s1438_s3 + $0x268] sm:$0xff] }
  0x20   : > { %299 = vst [vmem:[#allocation2 + $0x8] sm:$0xff] %v293_v37  ;;  %v292_v55 = vadd.f32 %v847_v25, %v283_v49  ;;  %v895_v63 = vld [vmem:[%s1438_s3 + $0x278] sm:$0xff]  ;;  %v990_v0 = vpack.c.bf16 %v890_v61, %v888_v60  ;;  %v892_v2 = vld [vmem:[%s1438_s3 + $0x260] sm:$0xff]  ;;  %v894_v3 = vld [vmem:[%s1438_s3 + $0x270] sm:$0xff]  ;;  %v1055_v61 = vmov 1966171168  }
  0x21   : > { %943 = vmatpush1.bf16.msra.mxu1 %v942_v28  ;;  %v992_v1 = vpack.c.bf16 %v895_v63, %v893_v62  ;;  %v897_v4 = vld [vmem:[%s1438_s3 + $0x288] sm:$0xff]  ;;  %v899_v5 = vld [vmem:[%s1438_s3 + $0x298] sm:$0xff]  ;;  %v994_v6 = vpack.c.bf16 %v894_v3, %v892_v2  ;;  %v896_v9 = vld [vmem:[%s1438_s3 + $0x280] sm:$0xff]  ;;  %v662_v62 = vunpack.c.l.s4 %v1055_v61  ;;  %v664_v63 = vlaneseq }
  0x22   : > { %975 = vmatpush1.bf16.msra.mxu0 %v974_v30  ;;  %945 = vmatprep.subr.bf16.mxu1 %v944_v31  ;;  %v294_v58 = vmax.f32 %v292_v55, 0.0  ;;  %v996_v8 = vpack.c.bf16 %v899_v5, %v897_v4  ;;  %v898_v10 = vld [vmem:[%s1438_s3 + $0x290] sm:$0xff]  ;;  %v901_v12 = vld [vmem:[%s1438_s3 + $0x2a8] sm:$0xff]  ;;  %v903_v13 = vld [vmem:[%s1438_s3 + $0x2b8] sm:$0xff] }
  0x23   : > { %977 = vmatprep.subr.bf16.mxu0 %v976_v35  ;;  %v998_v14 = vpack.c.bf16 %v898_v10, %v896_v9  ;;  %v1000_v15 = vpack.c.bf16 %v903_v13, %v901_v12  ;;  %v900_v16 = vld [vmem:[%s1438_s3 + $0x2a0] sm:$0xff]  ;;  %v902_v17 = vld [vmem:[%s1438_s3 + $0x2b0] sm:$0xff]  ;;  %v905_v18 = vld [vmem:[%s1438_s3 + $0x2c8] sm:$0xff]  ;;  %v663_v9 = vunpack.c.0.s8 %v662_v62  ;;  %v665_v10 = vshrl.u32 %v664_v63, 7 }
  0x24   : > { %300 = vst [vmem:[#allocation2 + $0x10] sm:$0xff] %v294_v58  ;;  %v1002_v19 = vpack.c.bf16 %v902_v17, %v900_v16  ;;  %v904_v21 = vld [vmem:[%s1438_s3 + $0x2c0] sm:$0xff]  ;;  %v906_v22 = vld [vmem:[%s1438_s3 + $0x2d0] sm:$0xff]  ;;  %v909_v23 = vld [vmem:[%s1438_s3 + $0x2e8] sm:$0xff]  ;;  %vm678_vm0 = vcmp.lt.s32.totalorder %v664_v63, 256 }
  0x25   : > { %947 = vmatpush1.bf16.msra.mxu1 %v946_v40  ;;  %v911_v24 = vld [vmem:[%s1438_s3 + $0x2f8] sm:$0xff]  ;;  %v1006_v25 = vpack.c.bf16 %v906_v22, %v904_v21  ;;  %v908_v27 = vld [vmem:[%s1438_s3 + $0x2e0] sm:$0xff]  ;;  %v910_v28 = vld [vmem:[%s1438_s3 + $0x2f0] sm:$0xff] }
  0x26   : > { %979 = vmatpush1.bf16.msra.mxu0 %v978_v41  ;;  %1012 = vmatprep.subr.bf16.mxu1 %v980_v42  ;;  %v1008_v26 = vpack.c.bf16 %v911_v24, %v909_v23  ;;  %v1010_v29 = vpack.c.bf16 %v910_v28, %v908_v27 }
  0x27   : > { %981 = vmatprep.subr.bf16.mxu0 %v980_v42  ;;  %v301_v56 = vld [vmem:[#allocation2 + $0x7] sm:$0xff] }
  0x28   : > { %435 = vmatmul.mubr.f32.vlgmr.msra.gmra.mrb[0].mxu1 %v293_v37 }
  0x29   : > { %512 = vmatmul.mubr.f32.vlgmr.msra.gmra.mrb[0].mxu0 %v301_v56  ;;  %1020 = vmatpush1.bf16.msra.mxu1 %v982_v48 }
  0x2a   : > { %983 = vmatpush1.bf16.msra.mxu0 %v982_v48  ;;  %1013 = vmatprep.subr.bf16.mxu1 %v984_v50 }
  0x2b   : > { %985 = vmatprep.subr.bf16.mxu0 %v984_v50  ;;  %440 = vmatprep.mubr.f32.mxu1 %v1054_v7  ;;  %v302_v11 = vld [vmem:[#allocation2 + $0xf] sm:$0xff] }
  0x2c   : > { %517 = vmatprep.mubr.f32.mxu0 %v1054_v7  ;;  %441 = vmatmul.mubr.f32.gmra.mrb[2].mxu1 %v294_v58  ;;  %v525_v30 = vld [vmem:[#allocation2 + $0x11] sm:$0xff]  ;;  %v524_v31 = vld [vmem:[#allocation2 + $0x9] sm:$0xff] }
  0x2d   : > { %1021 = vmatpush1.bf16.msra.mxu1 %v986_v57  ;;  %629 = vmatprep.mubr.f32.mxu1 %v1054_v7 }
  0x2e   : > { %987 = vmatpush1.bf16.msra.mxu0 %v986_v57  ;;  %1014 = vmatprep.subr.bf16.mxu1 %v988_v59 }
  0x2f   : > { %989 = vmatprep.subr.bf16.mxu0 %v988_v59  ;;  %518 = vmatmul.mubr.f32.gmra.mrb[2].mxu0 %v302_v11 }
  0x30   : > { %623 = vmatprep.mubr.f32.mxu0 %v1054_v7  ;;  %v907_v7 = vld [vmem:[%s1438_s3 + $0x2d8] sm:$0xff] }
  0x31   : > { %1022 = vmatpush1.bf16.msra.mxu1 %v990_v0  ;;  %v1004_v20 = vpack.c.bf16 %v907_v7, %v905_v18  ;;  %v666_v7 = vsub.s32 %v663_v9, %v665_v10 }
  0x32   : > { %991 = vmatpush1.bf16.msra.mxu0 %v990_v0  ;;  %1015 = vmatprep.subr.bf16.mxu1 %v992_v1 }
  0x33   : > { %993 = vmatprep.subr.bf16.mxu0 %v992_v1 }
  0x35   : > { %1023 = vmatpush1.bf16.msra.mxu1 %v994_v6 }
  0x36   : > { %995 = vmatpush1.bf16.msra.mxu0 %v994_v6  ;;  %1016 = vmatprep.subr.bf16.mxu1 %v996_v8 }
  0x37   : > { %997 = vmatprep.subr.bf16.mxu0 %v996_v8 }
  0x39   : > { %1024 = vmatpush1.bf16.msra.mxu1 %v998_v14 }
  0x3a   : > { %999 = vmatpush1.bf16.msra.mxu0 %v998_v14  ;;  %1017 = vmatprep.subr.bf16.mxu1 %v1000_v15 }
  0x3b   : > { %1001 = vmatprep.subr.bf16.mxu0 %v1000_v15 }
  0x3d   : > { %1025 = vmatpush1.bf16.msra.mxu1 %v1002_v19 }
  0x3e   : > { %1003 = vmatpush1.bf16.msra.mxu0 %v1002_v19  ;;  %1018 = vmatprep.subr.bf16.mxu1 %v1004_v20 }
  0x3f   : > { %1005 = vmatprep.subr.bf16.mxu0 %v1004_v20 }
  0x41   : > { %1026 = vmatpush1.bf16.msra.mxu1 %v1006_v25 }
  0x42   : > { %1007 = vmatpush1.bf16.msra.mxu0 %v1006_v25  ;;  %1019 = vmatprep.subr.bf16.mxu1 %v1008_v26 }
  0x43   : > { %1009 = vmatprep.subr.bf16.mxu0 %v1008_v26 }
  0x45   : > { %1027 = vmatpush1.bf16.msra.mxu1 %v1010_v29 }
  0x46   : > { %1011 = vmatpush1.bf16.msra.mxu0 %v1010_v29 }
  0x48   : > { %630 = vmatmul.mubr.f32.vlgmr.msra.gmra.mrb[4].mxu1 %v525_v30 }
  0x49   : > { %624 = vmatmul.mubr.f32.vlgmr.msra.gmra.mrb[0].mxu0 %v524_v31 }
  0xfb   : > { %v436_v32 = vpop.f32.mrb[0].mxu1 }
  0xfc   : > { %v438_v33 = vpop.f32.mrb[1].mxu1 }
  0xff   : > { %v442_v34 = vpop.f32.mrb[2].mxu1 }
 0x100   : > { %v444_v35 = vpop.f32.mrb[3].mxu1 }
 0x102   : > { %v519_v36 = vpop.f32.mrb[2].mxu0 }
 0x103   : > { %v520_v37 = vadd.f32 %v519_v36, %v442_v34  ;;  %v521_v38 = vpop.f32.mrb[3].mxu0 }
 0x104   : > { %v522_v39 = vadd.f32 %v521_v38, %v444_v35 }
 0x11b   : > { %v631_v40 = vpop.f32.mrb[4].mxu1 }
 0x11c   : > { %v625_v41 = vpop.f32.mrb[0].mxu0  ;;  %v638_v42 = vadd.f32 %v631_v40, %v520_v37  ;;  %v633_v43 = vpop.f32.mrb[5].mxu1 }
 0x11d   : > { %v1028_v44 = vadd.f32 %v625_v41, %v436_v32  ;;  %v627_v45 = vpop.f32.mrb[1].mxu0  ;;  %v639_v46 = vadd.f32 %v633_v43, %v522_v39 }
 0x11e   : > { %642 = vst [vmem:[%s264_s7 + $0x10] sm:$0xff] %v638_v42  ;;  %v683_v47 = vmul.f32 %v638_v42, %v638_v42  ;;  %v1029_v48 = vadd.f32 %v627_v45, %v438_v33 }
 0x11f   : > { %640 = vst [vmem:[%s264_s7] sm:$0xff] %v1028_v44  ;;  %v681_v49 = vmul.f32 %v1028_v44, %v1028_v44  ;;  %v644_v50 = vadd.f32 %v1028_v44, %v638_v42  ;;  %643 = vst [vmem:[%s264_s7 + $0x18] sm:$0xff] %v639_v46  ;;  %v684_v51 = vmul.f32 %v639_v46, %v639_v46 }
 0x120   : > { %641 = vst [vmem:[%s264_s7 + $0x8] sm:$0xff] %v1029_v48  ;;  %v682_v52 = vmul.f32 %v1029_v48, %v1029_v48  ;;  %v651_v53 = vadd.f32 %v1029_v48, %v639_v46 }
 0x121   : > { %v645_v54 = vrot.slane %v644_v50, 4  ;;  %v685_v55 = vadd.f32 %v683_v47, %v681_v49 }
 0x122   : > { %v652_v56 = vrot.slane %v651_v53, 4  ;;  %v692_v57 = vadd.f32 %v684_v51, %v682_v52 }
 0x123   : > { %v646_v58 = vadd.f32 %v645_v54, %v644_v50  ;;  %v686_v59 = vrot.slane %v685_v55, 4 }
 0x124   : > { %v653_v60 = vadd.f32 %v652_v56, %v651_v53  ;;  %v693_v0 = vrot.slane %v692_v57, 4 }
 0x125   : > { %v647_v1 = vrot.slane %v646_v58, 2  ;;  %v687_v2 = vadd.f32 %v686_v59, %v685_v55 }
 0x126   : > { %v654_v3 = vrot.slane %v653_v60, 2  ;;  %v694_v4 = vadd.f32 %v693_v0, %v692_v57 }
 0x127   : > { %v648_v5 = vadd.f32 %v647_v1, %v646_v58  ;;  %v688_v6 = vrot.slane %v687_v2, 2 }
 0x128   : > { %v655_v8 = vadd.f32 %v654_v3, %v653_v60  ;;  %v695_v11 = vrot.slane %v694_v4, 2 }
 0x129   : > { %v649_v12 = vrot.slane %v648_v5, 1  ;;  %v689_v13 = vadd.f32 %v688_v6, %v687_v2 }
 0x12a   : > { %v656_v14 = vrot.slane %v655_v8, 1  ;;  %v696_v15 = vadd.f32 %v695_v11, %v694_v4 }
 0x12b   : > { %v650_v16 = vadd.f32 %v649_v12, %v648_v5  ;;  %v690_v17 = vrot.slane %v689_v13, 1 }
 0x12c   : > { %v657_v18 = vadd.f32 %v656_v14, %v655_v8  ;;  %v697_v19 = vrot.slane %v696_v15, 1 }
 0x12d   : > { %v691_v20 = vadd.f32 %v690_v17, %v689_v13 }
 0x12e   : > { %v660_v21 = vcombine.low %v650_v16, %v657_v18  ;;  %v698_v22 = vadd.f32 %v697_v19, %v696_v15 }
 0x130   : > { %v667_v23 = vrot.slane %v660_v21, %v666_v7  ;;  %v701_v24 = vcombine.low %v691_v20, %v698_v22 }
 0x132   : > { %v674_v25 = vrot.slane %v667_v23, %v666_v7  ;;  %v708_v26 = vrot.slane %v701_v24, %v666_v7 }
 0x134   : > { %680 = vst.msk [vmem:[%s268_s11] sm:$0x3] %vm678_vm0, %v674_v25  ;;  %v715_v27 = vrot.slane %v708_v26, %v666_v7 }
 0x136   : > { %717 = vst.msk [vmem:[%s272_s13] sm:$0x3] %vm678_vm0, %v715_v27 }
 0x137 PF: > { %s17_s21 = sadd.s32 1, %s1052_s21  }
 0x138   : > { %p14_p4 = scmp.ge.s32.totalorder %s17_s21, 4  }
 0x13a   :  { %16 = sbr.rel (!%p14_p4) target bundleno = 1 (0x1), region = 92 }

</bundles_post_ra>
